<compile_context>
chip_gen: v7x
topology: tpu7x:2x2x1
jax: 0.10.0
libtpu: 0.0.40
codegen_flags: <defaults>
</compile_context>

<pallas_src>
import jax
import jax.numpy as jnp
from jax.experimental import pallas as pl
from jax.experimental.pallas import tpu as pltpu

# ---------------- config (small shapes consistent with the module) ----------
NUM_TAGS = 8
CHAR_VOCAB, CHAR_EMBED = 50, 16
SEG_VOCAB, SEG_EMBED = 5, 8
BIGRAM_VOCAB, BIGRAM_EMBED = 100, 8
USE_SEG_EMBED = True
USE_BIGRAM_EMBED = True
USE_CRF = False                   # -> softmax + argmax decode branch
HIDDEN_DIM = 32
HIDDEN_LAYERS = 1                 # single layer -> GRU dropout is a no-op
B, T = 2, 8
EMBED_SIZE = (CHAR_EMBED
              + (SEG_EMBED if USE_SEG_EMBED else 0)
              + (2 * BIGRAM_EMBED if USE_BIGRAM_EMBED else 0))


# ---------------- fused Pallas kernel: BiGRU + linear + softmax + argmax -----
# Gate-column layout of the packed weights (gate-interleaved, fwd|bwd per gate):
#   columns = [ r_f | r_b | z_f | z_b | n_f | n_b ]   (each block H wide)
# State h = [ h_fwd | h_bwd ]  (B, 2H).
# xj rows are time-major: row index = t*B + b; fwd half of each row is x[b, t],
# bwd half is x[b, T-1-t]  (pre-reversed in the wrapper).
def charpos_kernel(xj_ref, m2_ref, wih_ref, bi_ref, whh_ref, bhn_ref,
                   lw_ref, lb_ref, probs_ref, pred_ref):
    H2 = whh_ref.shape[0]          # 2H
    H = H2 // 2
    Bk, Tk = B, T

    # --- one batched MXU op: input projection for BOTH directions, ALL steps ---
    # bi_ref already contains b_ih (+ b_hh for the r/z gates).
    gi = jnp.dot(xj_ref[...], wih_ref[...],
                 preferred_element_type=jnp.float32) + bi_ref[...]   # (T*B, 6H)
    m2 = m2_ref[...]                                                 # (T*B, 2H)
    whh = whh_ref[...]                                               # (2H, 6H)
    bhn = jnp.broadcast_to(bhn_ref[...], (Bk, H2))                   # hoisted

    # --- fused fwd/bwd masked recurrence: only T serial matmuls ---------------
    h = jnp.zeros((Bk, H2), jnp.float32)        # [h_fwd | h_bwd]
    outs = [None] * Tk
    for s in range(Tk):                         # static unroll (T known at trace)
        g = gi[s * Bk:(s + 1) * Bk, :]                      # (B, 6H)
        gh = jnp.dot(h, whh, preferred_element_type=jnp.float32)
        r = jax.nn.sigmoid(g[:, :H2] + gh[:, :H2])
        z = jax.nn.sigmoid(g[:, H2:2 * H2] + gh[:, H2:2 * H2])
        n = jnp.tanh(g[:, 2 * H2:] + r * (gh[:, 2 * H2:] + bhn))
        h_new = (1.0 - z) * n + z * h
        mt = m2[s * Bk:(s + 1) * Bk, :]                     # (B, 2H) 0/1 mask
        h = mt * h_new + (1.0 - mt) * h                     # packed-seq semantics
        outs[s] = mt * h                                    # zero at padded steps

    # --- realign bwd stream to forward time order (time-major rows, t*B+b) ----
    h2 = jnp.concatenate(
        [jnp.concatenate([outs[t][:, :H], outs[Tk - 1 - t][:, H:]], axis=1)
         for t in range(Tk)], axis=0)                        # (T*B, 2H)

    # --- classifier head: linear + softmax + argmax (argmax on logits) --------
    logits = jnp.dot(h2, lw_ref[...],
                     preferred_element_type=jnp.float32) + lb_ref[...]
    mx = jnp.max(logits, axis=-1, keepdims=True)
    e = jnp.exp(logits - mx)
    denom = jnp.sum(e, axis=-1, keepdims=True)
    probs_ref[...] = e * pl.reciprocal(denom, approx=True)   # F.softmax(out, dim=2)
    pred_ref[...] = jnp.argmax(logits, axis=-1).astype(jnp.int32)[:, None]


def _vmem(n):
    return [pl.BlockSpec(memory_space=pltpu.MemorySpace.VMEM) for _ in range(n)]


# ---------------- weight packing (plain JAX glue, runs under the same jit) ---
def _pack_gate_interleaved(wf, wb, H):
    # wf: (Df, 3H) [r|z|n], wb: (Db, 3H) -> (Df+Db, 6H) block-diag rows,
    # gate-interleaved columns [r_f|r_b|z_f|z_b|n_f|n_b].
    zf = jnp.zeros((wf.shape[0], H), jnp.float32)
    zb = jnp.zeros((wb.shape[0], H), jnp.float32)
    top = jnp.concatenate([wf[:, :H], zf, wf[:, H:2 * H], zf, wf[:, 2 * H:], zf],
                          axis=1)
    bot = jnp.concatenate([zb, wb[:, :H], zb, wb[:, H:2 * H], zb, wb[:, 2 * H:]],
                          axis=1)
    return jnp.concatenate([top, bot], axis=0)


def _pack_bias(gp, H):
    bf, bb = gp["bih_f"][0], gp["bih_b"][0]
    hf, hb = gp["bhh_f"][0], gp["bhh_b"][0]
    # r/z gates: b_ih + b_hh can be pre-summed; n gate: only b_in here,
    # b_hn stays inside r*(...) and is passed separately.
    bi6 = jnp.concatenate([bf[:H] + hf[:H], bb[:H] + hb[:H],
                           bf[H:2 * H] + hf[H:2 * H], bb[H:2 * H] + hb[H:2 * H],
                           bf[2 * H:], bb[2 * H:]])[None, :]          # (1, 6H)
    bhn2 = jnp.concatenate([hf[2 * H:], hb[2 * H:]])[None, :]         # (1, 2H)
    return bi6, bhn2


def embed_glue(params, tokens, bigram, seg_tags):
    out = params["char_emb"][tokens]                                  # (B,T,Ec)
    if USE_BIGRAM_EMBED:
        bi = jnp.concatenate(
            [params["bigram_emb"][bigram[:, :, i]] for i in range(bigram.shape[2])],
            axis=2)
        out = jnp.concatenate((out, bi), axis=2)
    if USE_SEG_EMBED:
        out = jnp.concatenate((out, params["seg_emb"][seg_tags]), axis=2)
    return out                                                        # (B,T,E)


# ---------------- CharPOS forward (decode=True, use_crf=False) ---------------
@jax.jit
def charpos_forward(params, tokens, masks, bigram, seg_tags):
    H = HIDDEN_DIM
    maskf = masks.astype(jnp.float32)
    x = embed_glue(params, tokens, bigram, seg_tags)                  # (B,T,E)
    # self.in_dropout: eval mode -> identity
    gp = params["gru"]
    wih6 = _pack_gate_interleaved(gp["wih_f"], gp["wih_b"], H)        # (2E, 6H)
    whh6 = _pack_gate_interleaved(gp["whh_f"], gp["whh_b"], H)        # (2H, 6H)
    bi6, bhn2 = _pack_bias(gp, H)

    # fwd input at time t, bwd input at time T-1-t, side by side; time-major rows.
    xj = jnp.concatenate([x, x[:, ::-1, :]], axis=-1)                 # (B,T,2E)
    xj_flat = xj.transpose(1, 0, 2).reshape(T * B, 2 * EMBED_SIZE)
    m2 = jnp.concatenate([
        jnp.broadcast_to(maskf[:, :, None], (B, T, H)),
        jnp.broadcast_to(maskf[:, ::-1][:, :, None], (B, T, H))], axis=-1)
    m2_flat = m2.transpose(1, 0, 2).reshape(T * B, 2 * H)

    probs_flat, pred_flat = pl.pallas_call(
        charpos_kernel,
        out_shape=(jax.ShapeDtypeStruct((T * B, NUM_TAGS), jnp.float32),
                   jax.ShapeDtypeStruct((T * B, 1), jnp.int32)),
        in_specs=_vmem(8),
        out_specs=tuple(_vmem(2)),
    )(xj_flat, m2_flat, wih6, bi6, whh6, bhn2, params["lin_w"], params["lin_b"])

    probs = probs_flat.reshape(T, B, NUM_TAGS).transpose(1, 0, 2)     # (B,T,NT)
    pred = pred_flat.reshape(T, B).T                                  # (B,T)
    return probs, pred


# ---------------- pure-JAX reference (for correctness check) -----------------
def _gru_cell_ref(x_t, h, wih, whh, bih, bhh, H):
    gi = jnp.dot(x_t, wih) + bih
    gh = jnp.dot(h, whh) + bhh
    r = jax.nn.sigmoid(gi[:, :H] + gh[:, :H])
    z = jax.nn.sigmoid(gi[:, H:2 * H] + gh[:, H:2 * H])
    n = jnp.tanh(gi[:, 2 * H:] + r * gh[:, 2 * H:])
    return (1.0 - z) * n + z * h


def _gru_dir_ref(x, maskf, wih, whh, bih, bhh, reverse):
    Bn, Tn, _ = x.shape
    H = whh.shape[0]
    h = jnp.zeros((Bn, H), jnp.float32)
    outs = [None] * Tn
    ts = range(Tn - 1, -1, -1) if reverse else range(Tn)
    for t in ts:
        m_t = maskf[:, t:t + 1]
        h_new = _gru_cell_ref(x[:, t, :], h, wih, whh, bih, bhh, H)
        h = m_t * h_new + (1.0 - m_t) * h
        outs[t] = m_t * h
    return jnp.stack(outs, axis=1)


def charpos_ref(params, tokens, masks, bigram, seg_tags):
    maskf = masks.astype(jnp.float32)
    out = embed_glue(params, tokens, bigram, seg_tags)
    gp = params["gru"]
    hf = _gru_dir_ref(out, maskf, gp["wih_f"], gp["whh_f"], gp["bih_f"], gp["bhh_f"], False)
    hb = _gru_dir_ref(out, maskf, gp["wih_b"], gp["whh_b"], gp["bih_b"], gp["bhh_b"], True)
    h2 = jnp.concatenate([hf, hb], axis=-1)
    logits = jnp.einsum("btd,dn->btn", h2, params["lin_w"]) + params["lin_b"][0]
    probs = jax.nn.softmax(logits, axis=2)
    pred = jnp.argmax(probs, axis=2)
    return probs, pred


# ---------------- deterministic params / inputs ------------------------------
def make_params(key):
    ks = jax.random.split(key, 16)
    H, E = HIDDEN_DIM, EMBED_SIZE
    s = 1.0 / jnp.sqrt(H)
    return {
        "char_emb": 0.1 * jax.random.normal(ks[0], (CHAR_VOCAB, CHAR_EMBED), jnp.float32),
        "seg_emb": 0.1 * jax.random.normal(ks[1], (SEG_VOCAB, SEG_EMBED), jnp.float32),
        "bigram_emb": 0.1 * jax.random.normal(ks[2], (BIGRAM_VOCAB, BIGRAM_EMBED), jnp.float32),
        "lin_w": 0.1 * jax.random.normal(ks[3], (2 * H, NUM_TAGS), jnp.float32),
        "lin_b": 0.1 * jax.random.normal(ks[4], (1, NUM_TAGS), jnp.float32),
        "gru": {
            # transposed vs PyTorch: weight_ih (3H,E)->(E,3H), weight_hh (3H,H)->(H,3H)
            "wih_f": s * jax.random.normal(ks[5], (E, 3 * H), jnp.float32),
            "whh_f": s * jax.random.normal(ks[6], (H, 3 * H), jnp.float32),
            "bih_f": s * jax.random.normal(ks[7], (1, 3 * H), jnp.float32),
            "bhh_f": s * jax.random.normal(ks[8], (1, 3 * H), jnp.float32),
            "wih_b": s * jax.random.normal(ks[9], (E, 3 * H), jnp.float32),
            "whh_b": s * jax.random.normal(ks[10], (H, 3 * H), jnp.float32),
            "bih_b": s * jax.random.normal(ks[11], (1, 3 * H), jnp.float32),
            "bhh_b": s * jax.random.normal(ks[12], (1, 3 * H), jnp.float32),
        },
    }


if __name__ == "__main__":
    key = jax.random.PRNGKey(0)
    kp, k1, k2, k3 = jax.random.split(key, 4)
    params = make_params(kp)

    tokens = jax.random.randint(k1, (B, T), 0, CHAR_VOCAB, dtype=jnp.int32)
    bigram = jax.random.randint(k2, (B, T, 2), 0, BIGRAM_VOCAB, dtype=jnp.int32)
    seg_tags = jax.random.randint(k3, (B, T), 0, SEG_VOCAB, dtype=jnp.int32)
    lengths = jnp.array([T, 5], dtype=jnp.int32)                 # one full-length seq
    masks = (jnp.arange(T)[None, :] < lengths[:, None]).astype(jnp.int32)

    probs, pred = charpos_forward(params, tokens, masks, bigram, seg_tags)
    probs = jax.block_until_ready(probs)
    pred = jax.block_until_ready(pred)

    probs_ref, pred_ref = charpos_ref(params, tokens, masks, bigram, seg_tags)
    assert probs.shape == (B, T, NUM_TAGS) and pred.shape == (B, T)
    assert jnp.allclose(probs, probs_ref, atol=5e-3, rtol=5e-3), "probs mismatch vs JAX reference"
    assert jnp.array_equal(pred, pred_ref), "pred mismatch vs JAX reference"

    print("KERNEL_OK")
</pallas_src>

<mosaic_0001>
module attributes {stable_mosaic.version = 11 : i64} {
  func.func @charpos_kernel(%arg0: memref<16x80xf32, #tpu.memory_space<vmem>>, %arg1: memref<16x64xf32, #tpu.memory_space<vmem>>, %arg2: memref<80x192xf32, #tpu.memory_space<vmem>>, %arg3: memref<1x192xf32, #tpu.memory_space<vmem>>, %arg4: memref<64x192xf32, #tpu.memory_space<vmem>>, %arg5: memref<1x64xf32, #tpu.memory_space<vmem>>, %arg6: memref<64x8xf32, #tpu.memory_space<vmem>>, %arg7: memref<1x8xf32, #tpu.memory_space<vmem>>, %arg8: memref<16x8xf32, #tpu.memory_space<vmem>>, %arg9: memref<16x1xi32, #tpu.memory_space<vmem>>) attributes {dimension_semantics = [], scalar_prefetch = 0 : i64, scratch_operands = 0 : i64, tpu.core_type = #tpu.core_type<tc>} {
    %c0 = arith.constant 0 : index
    %c0_0 = arith.constant 0 : index
    %0 = vector.load %arg0[%c0, %c0_0] : memref<16x80xf32, #tpu.memory_space<vmem>>, vector<16x80xf32>
    %c0_1 = arith.constant 0 : index
    %c0_2 = arith.constant 0 : index
    %1 = vector.load %arg2[%c0_1, %c0_2] : memref<80x192xf32, #tpu.memory_space<vmem>>, vector<80x192xf32>
    %cst = arith.constant dense<0.000000e+00> : vector<16x192xf32>
    %2 = tpu.matmul %0, %1, %cst {dimension_numbers = #tpu.dot_dimension_numbers<[1], [0], [0], [1], [0, 0, 1, 1], [], []>} : vector<16x80xf32>, vector<80x192xf32>, vector<16x192xf32> -> vector<16x192xf32>
    %c0_3 = arith.constant 0 : index
    %c0_4 = arith.constant 0 : index
    %3 = vector.load %arg3[%c0_3, %c0_4] : memref<1x192xf32, #tpu.memory_space<vmem>>, vector<1x192xf32>
    %4 = vector.broadcast %3 : vector<1x192xf32> to vector<16x192xf32>
    %5 = arith.addf %2, %4 : vector<16x192xf32>
    %c0_5 = arith.constant 0 : index
    %c0_6 = arith.constant 0 : index
    %6 = vector.load %arg1[%c0_5, %c0_6] : memref<16x64xf32, #tpu.memory_space<vmem>>, vector<16x64xf32>
    %c0_7 = arith.constant 0 : index
    %c0_8 = arith.constant 0 : index
    %7 = vector.load %arg4[%c0_7, %c0_8] : memref<64x192xf32, #tpu.memory_space<vmem>>, vector<64x192xf32>
    %c0_9 = arith.constant 0 : index
    %c0_10 = arith.constant 0 : index
    %8 = vector.load %arg5[%c0_9, %c0_10] : memref<1x64xf32, #tpu.memory_space<vmem>>, vector<1x64xf32>
    %9 = vector.shape_cast %8 : vector<1x64xf32> to vector<1x64xf32>
    %10 = vector.broadcast %9 : vector<1x64xf32> to vector<2x64xf32>
    %cst_11 = arith.constant 0.000000e+00 : f32
    %11 = vector.broadcast %cst_11 : f32 to vector<2x64xf32>
    %12 = vector.extract_strided_slice %5 {offsets = [0, 0], sizes = [2, 192], strides = [1, 1]} : vector<16x192xf32> to vector<2x192xf32>
    %cst_12 = arith.constant dense<0.000000e+00> : vector<2x192xf32>
    %13 = tpu.matmul %11, %7, %cst_12 {dimension_numbers = #tpu.dot_dimension_numbers<[1], [0], [0], [1], [0, 0, 1, 1], [], []>} : vector<2x64xf32>, vector<64x192xf32>, vector<2x192xf32> -> vector<2x192xf32>
    %14 = vector.extract_strided_slice %12 {offsets = [0, 0], sizes = [2, 64], strides = [1, 1]} : vector<2x192xf32> to vector<2x64xf32>
    %15 = vector.extract_strided_slice %13 {offsets = [0, 0], sizes = [2, 64], strides = [1, 1]} : vector<2x192xf32> to vector<2x64xf32>
    %16 = arith.addf %14, %15 : vector<2x64xf32>
    %17 = arith.negf %16 : vector<2x64xf32>
    %18 = math.exp %17 : vector<2x64xf32>
    %cst_13 = arith.constant 1.000000e+00 : f32
    %19 = vector.broadcast %cst_13 : f32 to vector<2x64xf32>
    %20 = arith.addf %19, %18 : vector<2x64xf32>
    %21 = arith.divf %19, %20 : vector<2x64xf32>
    %22 = vector.extract_strided_slice %12 {offsets = [0, 64], sizes = [2, 64], strides = [1, 1]} : vector<2x192xf32> to vector<2x64xf32>
    %23 = vector.extract_strided_slice %13 {offsets = [0, 64], sizes = [2, 64], strides = [1, 1]} : vector<2x192xf32> to vector<2x64xf32>
    %24 = arith.addf %22, %23 : vector<2x64xf32>
    %25 = arith.negf %24 : vector<2x64xf32>
    %26 = math.exp %25 : vector<2x64xf32>
    %cst_14 = arith.constant 1.000000e+00 : f32
    %27 = vector.broadcast %cst_14 : f32 to vector<2x64xf32>
    %28 = arith.addf %27, %26 : vector<2x64xf32>
    %29 = arith.divf %27, %28 : vector<2x64xf32>
    %30 = vector.extract_strided_slice %12 {offsets = [0, 128], sizes = [2, 64], strides = [1, 1]} : vector<2x192xf32> to vector<2x64xf32>
    %31 = vector.extract_strided_slice %13 {offsets = [0, 128], sizes = [2, 64], strides = [1, 1]} : vector<2x192xf32> to vector<2x64xf32>
    %32 = arith.addf %31, %10 : vector<2x64xf32>
    %33 = arith.mulf %21, %32 : vector<2x64xf32>
    %34 = arith.addf %30, %33 : vector<2x64xf32>
    %35 = math.tanh %34 : vector<2x64xf32>
    %cst_15 = arith.constant 1.000000e+00 : f32
    %36 = vector.broadcast %cst_15 : f32 to vector<2x64xf32>
    %37 = arith.subf %36, %29 : vector<2x64xf32>
    %38 = arith.mulf %37, %35 : vector<2x64xf32>
    %39 = arith.mulf %29, %11 : vector<2x64xf32>
    %40 = arith.addf %38, %39 : vector<2x64xf32>
    %41 = vector.extract_strided_slice %6 {offsets = [0, 0], sizes = [2, 64], strides = [1, 1]} : vector<16x64xf32> to vector<2x64xf32>
    %42 = arith.mulf %41, %40 : vector<2x64xf32>
    %cst_16 = arith.constant 1.000000e+00 : f32
    %43 = vector.broadcast %cst_16 : f32 to vector<2x64xf32>
    %44 = arith.subf %43, %41 : vector<2x64xf32>
    %45 = arith.mulf %44, %11 : vector<2x64xf32>
    %46 = arith.addf %42, %45 : vector<2x64xf32>
    %47 = arith.mulf %41, %46 : vector<2x64xf32>
    %48 = vector.extract_strided_slice %5 {offsets = [2, 0], sizes = [2, 192], strides = [1, 1]} : vector<16x192xf32> to vector<2x192xf32>
    %cst_17 = arith.constant dense<0.000000e+00> : vector<2x192xf32>
    %49 = tpu.matmul %46, %7, %cst_17 {dimension_numbers = #tpu.dot_dimension_numbers<[1], [0], [0], [1], [0, 0, 1, 1], [], []>} : vector<2x64xf32>, vector<64x192xf32>, vector<2x192xf32> -> vector<2x192xf32>
    %50 = vector.extract_strided_slice %48 {offsets = [0, 0], sizes = [2, 64], strides = [1, 1]} : vector<2x192xf32> to vector<2x64xf32>
    %51 = vector.extract_strided_slice %49 {offsets = [0, 0], sizes = [2, 64], strides = [1, 1]} : vector<2x192xf32> to vector<2x64xf32>
    %52 = arith.addf %50, %51 : vector<2x64xf32>
    %53 = arith.negf %52 : vector<2x64xf32>
    %54 = math.exp %53 : vector<2x64xf32>
    %cst_18 = arith.constant 1.000000e+00 : f32
    %55 = vector.broadcast %cst_18 : f32 to vector<2x64xf32>
    %56 = arith.addf %55, %54 : vector<2x64xf32>
    %57 = arith.divf %55, %56 : vector<2x64xf32>
    %58 = vector.extract_strided_slice %48 {offsets = [0, 64], sizes = [2, 64], strides = [1, 1]} : vector<2x192xf32> to vector<2x64xf32>
    %59 = vector.extract_strided_slice %49 {offsets = [0, 64], sizes = [2, 64], strides = [1, 1]} : vector<2x192xf32> to vector<2x64xf32>
    %60 = arith.addf %58, %59 : vector<2x64xf32>
    %61 = arith.negf %60 : vector<2x64xf32>
    %62 = math.exp %61 : vector<2x64xf32>
    %cst_19 = arith.constant 1.000000e+00 : f32
    %63 = vector.broadcast %cst_19 : f32 to vector<2x64xf32>
    %64 = arith.addf %63, %62 : vector<2x64xf32>
    %65 = arith.divf %63, %64 : vector<2x64xf32>
    %66 = vector.extract_strided_slice %48 {offsets = [0, 128], sizes = [2, 64], strides = [1, 1]} : vector<2x192xf32> to vector<2x64xf32>
    %67 = vector.extract_strided_slice %49 {offsets = [0, 128], sizes = [2, 64], strides = [1, 1]} : vector<2x192xf32> to vector<2x64xf32>
    %68 = arith.addf %67, %10 : vector<2x64xf32>
    %69 = arith.mulf %57, %68 : vector<2x64xf32>
    %70 = arith.addf %66, %69 : vector<2x64xf32>
    %71 = math.tanh %70 : vector<2x64xf32>
    %cst_20 = arith.constant 1.000000e+00 : f32
    %72 = vector.broadcast %cst_20 : f32 to vector<2x64xf32>
    %73 = arith.subf %72, %65 : vector<2x64xf32>
    %74 = arith.mulf %73, %71 : vector<2x64xf32>
    %75 = arith.mulf %65, %46 : vector<2x64xf32>
    %76 = arith.addf %74, %75 : vector<2x64xf32>
    %77 = vector.extract_strided_slice %6 {offsets = [2, 0], sizes = [2, 64], strides = [1, 1]} : vector<16x64xf32> to vector<2x64xf32>
    %78 = arith.mulf %77, %76 : vector<2x64xf32>
    %cst_21 = arith.constant 1.000000e+00 : f32
    %79 = vector.broadcast %cst_21 : f32 to vector<2x64xf32>
    %80 = arith.subf %79, %77 : vector<2x64xf32>
    %81 = arith.mulf %80, %46 : vector<2x64xf32>
    %82 = arith.addf %78, %81 : vector<2x64xf32>
    %83 = arith.mulf %77, %82 : vector<2x64xf32>
    %84 = vector.extract_strided_slice %5 {offsets = [4, 0], sizes = [2, 192], strides = [1, 1]} : vector<16x192xf32> to vector<2x192xf32>
    %cst_22 = arith.constant dense<0.000000e+00> : vector<2x192xf32>
    %85 = tpu.matmul %82, %7, %cst_22 {dimension_numbers = #tpu.dot_dimension_numbers<[1], [0], [0], [1], [0, 0, 1, 1], [], []>} : vector<2x64xf32>, vector<64x192xf32>, vector<2x192xf32> -> vector<2x192xf32>
    %86 = vector.extract_strided_slice %84 {offsets = [0, 0], sizes = [2, 64], strides = [1, 1]} : vector<2x192xf32> to vector<2x64xf32>
    %87 = vector.extract_strided_slice %85 {offsets = [0, 0], sizes = [2, 64], strides = [1, 1]} : vector<2x192xf32> to vector<2x64xf32>
    %88 = arith.addf %86, %87 : vector<2x64xf32>
    %89 = arith.negf %88 : vector<2x64xf32>
    %90 = math.exp %89 : vector<2x64xf32>
    %cst_23 = arith.constant 1.000000e+00 : f32
    %91 = vector.broadcast %cst_23 : f32 to vector<2x64xf32>
    %92 = arith.addf %91, %90 : vector<2x64xf32>
    %93 = arith.divf %91, %92 : vector<2x64xf32>
    %94 = vector.extract_strided_slice %84 {offsets = [0, 64], sizes = [2, 64], strides = [1, 1]} : vector<2x192xf32> to vector<2x64xf32>
    %95 = vector.extract_strided_slice %85 {offsets = [0, 64], sizes = [2, 64], strides = [1, 1]} : vector<2x192xf32> to vector<2x64xf32>
    %96 = arith.addf %94, %95 : vector<2x64xf32>
    %97 = arith.negf %96 : vector<2x64xf32>
    %98 = math.exp %97 : vector<2x64xf32>
    %cst_24 = arith.constant 1.000000e+00 : f32
    %99 = vector.broadcast %cst_24 : f32 to vector<2x64xf32>
    %100 = arith.addf %99, %98 : vector<2x64xf32>
    %101 = arith.divf %99, %100 : vector<2x64xf32>
    %102 = vector.extract_strided_slice %84 {offsets = [0, 128], sizes = [2, 64], strides = [1, 1]} : vector<2x192xf32> to vector<2x64xf32>
    %103 = vector.extract_strided_slice %85 {offsets = [0, 128], sizes = [2, 64], strides = [1, 1]} : vector<2x192xf32> to vector<2x64xf32>
    %104 = arith.addf %103, %10 : vector<2x64xf32>
    %105 = arith.mulf %93, %104 : vector<2x64xf32>
    %106 = arith.addf %102, %105 : vector<2x64xf32>
    %107 = math.tanh %106 : vector<2x64xf32>
    %cst_25 = arith.constant 1.000000e+00 : f32
    %108 = vector.broadcast %cst_25 : f32 to vector<2x64xf32>
    %109 = arith.subf %108, %101 : vector<2x64xf32>
    %110 = arith.mulf %109, %107 : vector<2x64xf32>
    %111 = arith.mulf %101, %82 : vector<2x64xf32>
    %112 = arith.addf %110, %111 : vector<2x64xf32>
    %113 = vector.extract_strided_slice %6 {offsets = [4, 0], sizes = [2, 64], strides = [1, 1]} : vector<16x64xf32> to vector<2x64xf32>
    %114 = arith.mulf %113, %112 : vector<2x64xf32>
    %cst_26 = arith.constant 1.000000e+00 : f32
    %115 = vector.broadcast %cst_26 : f32 to vector<2x64xf32>
    %116 = arith.subf %115, %113 : vector<2x64xf32>
    %117 = arith.mulf %116, %82 : vector<2x64xf32>
    %118 = arith.addf %114, %117 : vector<2x64xf32>
    %119 = arith.mulf %113, %118 : vector<2x64xf32>
    %120 = vector.extract_strided_slice %5 {offsets = [6, 0], sizes = [2, 192], strides = [1, 1]} : vector<16x192xf32> to vector<2x192xf32>
    %cst_27 = arith.constant dense<0.000000e+00> : vector<2x192xf32>
    %121 = tpu.matmul %118, %7, %cst_27 {dimension_numbers = #tpu.dot_dimension_numbers<[1], [0], [0], [1], [0, 0, 1, 1], [], []>} : vector<2x64xf32>, vector<64x192xf32>, vector<2x192xf32> -> vector<2x192xf32>
    %122 = vector.extract_strided_slice %120 {offsets = [0, 0], sizes = [2, 64], strides = [1, 1]} : vector<2x192xf32> to vector<2x64xf32>
    %123 = vector.extract_strided_slice %121 {offsets = [0, 0], sizes = [2, 64], strides = [1, 1]} : vector<2x192xf32> to vector<2x64xf32>
    %124 = arith.addf %122, %123 : vector<2x64xf32>
    %125 = arith.negf %124 : vector<2x64xf32>
    %126 = math.exp %125 : vector<2x64xf32>
    %cst_28 = arith.constant 1.000000e+00 : f32
    %127 = vector.broadcast %cst_28 : f32 to vector<2x64xf32>
    %128 = arith.addf %127, %126 : vector<2x64xf32>
    %129 = arith.divf %127, %128 : vector<2x64xf32>
    %130 = vector.extract_strided_slice %120 {offsets = [0, 64], sizes = [2, 64], strides = [1, 1]} : vector<2x192xf32> to vector<2x64xf32>
    %131 = vector.extract_strided_slice %121 {offsets = [0, 64], sizes = [2, 64], strides = [1, 1]} : vector<2x192xf32> to vector<2x64xf32>
    %132 = arith.addf %130, %131 : vector<2x64xf32>
    %133 = arith.negf %132 : vector<2x64xf32>
    %134 = math.exp %133 : vector<2x64xf32>
    %cst_29 = arith.constant 1.000000e+00 : f32
    %135 = vector.broadcast %cst_29 : f32 to vector<2x64xf32>
    %136 = arith.addf %135, %134 : vector<2x64xf32>
    %137 = arith.divf %135, %136 : vector<2x64xf32>
    %138 = vector.extract_strided_slice %120 {offsets = [0, 128], sizes = [2, 64], strides = [1, 1]} : vector<2x192xf32> to vector<2x64xf32>
    %139 = vector.extract_strided_slice %121 {offsets = [0, 128], sizes = [2, 64], strides = [1, 1]} : vector<2x192xf32> to vector<2x64xf32>
    %140 = arith.addf %139, %10 : vector<2x64xf32>
    %141 = arith.mulf %129, %140 : vector<2x64xf32>
    %142 = arith.addf %138, %141 : vector<2x64xf32>
    %143 = math.tanh %142 : vector<2x64xf32>
    %cst_30 = arith.constant 1.000000e+00 : f32
    %144 = vector.broadcast %cst_30 : f32 to vector<2x64xf32>
    %145 = arith.subf %144, %137 : vector<2x64xf32>
    %146 = arith.mulf %145, %143 : vector<2x64xf32>
    %147 = arith.mulf %137, %118 : vector<2x64xf32>
    %148 = arith.addf %146, %147 : vector<2x64xf32>
    %149 = vector.extract_strided_slice %6 {offsets = [6, 0], sizes = [2, 64], strides = [1, 1]} : vector<16x64xf32> to vector<2x64xf32>
    %150 = arith.mulf %149, %148 : vector<2x64xf32>
    %cst_31 = arith.constant 1.000000e+00 : f32
    %151 = vector.broadcast %cst_31 : f32 to vector<2x64xf32>
    %152 = arith.subf %151, %149 : vector<2x64xf32>
    %153 = arith.mulf %152, %118 : vector<2x64xf32>
    %154 = arith.addf %150, %153 : vector<2x64xf32>
    %155 = arith.mulf %149, %154 : vector<2x64xf32>
    %156 = vector.extract_strided_slice %5 {offsets = [8, 0], sizes = [2, 192], strides = [1, 1]} : vector<16x192xf32> to vector<2x192xf32>
    %cst_32 = arith.constant dense<0.000000e+00> : vector<2x192xf32>
    %157 = tpu.matmul %154, %7, %cst_32 {dimension_numbers = #tpu.dot_dimension_numbers<[1], [0], [0], [1], [0, 0, 1, 1], [], []>} : vector<2x64xf32>, vector<64x192xf32>, vector<2x192xf32> -> vector<2x192xf32>
    %158 = vector.extract_strided_slice %156 {offsets = [0, 0], sizes = [2, 64], strides = [1, 1]} : vector<2x192xf32> to vector<2x64xf32>
    %159 = vector.extract_strided_slice %157 {offsets = [0, 0], sizes = [2, 64], strides = [1, 1]} : vector<2x192xf32> to vector<2x64xf32>
    %160 = arith.addf %158, %159 : vector<2x64xf32>
    %161 = arith.negf %160 : vector<2x64xf32>
    %162 = math.exp %161 : vector<2x64xf32>
    %cst_33 = arith.constant 1.000000e+00 : f32
    %163 = vector.broadcast %cst_33 : f32 to vector<2x64xf32>
    %164 = arith.addf %163, %162 : vector<2x64xf32>
    %165 = arith.divf %163, %164 : vector<2x64xf32>
    %166 = vector.extract_strided_slice %156 {offsets = [0, 64], sizes = [2, 64], strides = [1, 1]} : vector<2x192xf32> to vector<2x64xf32>
    %167 = vector.extract_strided_slice %157 {offsets = [0, 64], sizes = [2, 64], strides = [1, 1]} : vector<2x192xf32> to vector<2x64xf32>
    %168 = arith.addf %166, %167 : vector<2x64xf32>
    %169 = arith.negf %168 : vector<2x64xf32>
    %170 = math.exp %169 : vector<2x64xf32>
    %cst_34 = arith.constant 1.000000e+00 : f32
    %171 = vector.broadcast %cst_34 : f32 to vector<2x64xf32>
    %172 = arith.addf %171, %170 : vector<2x64xf32>
    %173 = arith.divf %171, %172 : vector<2x64xf32>
    %174 = vector.extract_strided_slice %156 {offsets = [0, 128], sizes = [2, 64], strides = [1, 1]} : vector<2x192xf32> to vector<2x64xf32>
    %175 = vector.extract_strided_slice %157 {offsets = [0, 128], sizes = [2, 64], strides = [1, 1]} : vector<2x192xf32> to vector<2x64xf32>
    %176 = arith.addf %175, %10 : vector<2x64xf32>
    %177 = arith.mulf %165, %176 : vector<2x64xf32>
    %178 = arith.addf %174, %177 : vector<2x64xf32>
    %179 = math.tanh %178 : vector<2x64xf32>
    %cst_35 = arith.constant 1.000000e+00 : f32
    %180 = vector.broadcast %cst_35 : f32 to vector<2x64xf32>
    %181 = arith.subf %180, %173 : vector<2x64xf32>
    %182 = arith.mulf %181, %179 : vector<2x64xf32>
    %183 = arith.mulf %173, %154 : vector<2x64xf32>
    %184 = arith.addf %182, %183 : vector<2x64xf32>
    %185 = vector.extract_strided_slice %6 {offsets = [8, 0], sizes = [2, 64], strides = [1, 1]} : vector<16x64xf32> to vector<2x64xf32>
    %186 = arith.mulf %185, %184 : vector<2x64xf32>
    %cst_36 = arith.constant 1.000000e+00 : f32
    %187 = vector.broadcast %cst_36 : f32 to vector<2x64xf32>
    %188 = arith.subf %187, %185 : vector<2x64xf32>
    %189 = arith.mulf %188, %154 : vector<2x64xf32>
    %190 = arith.addf %186, %189 : vector<2x64xf32>
    %191 = arith.mulf %185, %190 : vector<2x64xf32>
    %192 = vector.extract_strided_slice %5 {offsets = [10, 0], sizes = [2, 192], strides = [1, 1]} : vector<16x192xf32> to vector<2x192xf32>
    %cst_37 = arith.constant dense<0.000000e+00> : vector<2x192xf32>
    %193 = tpu.matmul %190, %7, %cst_37 {dimension_numbers = #tpu.dot_dimension_numbers<[1], [0], [0], [1], [0, 0, 1, 1], [], []>} : vector<2x64xf32>, vector<64x192xf32>, vector<2x192xf32> -> vector<2x192xf32>
    %194 = vector.extract_strided_slice %192 {offsets = [0, 0], sizes = [2, 64], strides = [1, 1]} : vector<2x192xf32> to vector<2x64xf32>
    %195 = vector.extract_strided_slice %193 {offsets = [0, 0], sizes = [2, 64], strides = [1, 1]} : vector<2x192xf32> to vector<2x64xf32>
    %196 = arith.addf %194, %195 : vector<2x64xf32>
    %197 = arith.negf %196 : vector<2x64xf32>
    %198 = math.exp %197 : vector<2x64xf32>
    %cst_38 = arith.constant 1.000000e+00 : f32
    %199 = vector.broadcast %cst_38 : f32 to vector<2x64xf32>
    %200 = arith.addf %199, %198 : vector<2x64xf32>
    %201 = arith.divf %199, %200 : vector<2x64xf32>
    %202 = vector.extract_strided_slice %192 {offsets = [0, 64], sizes = [2, 64], strides = [1, 1]} : vector<2x192xf32> to vector<2x64xf32>
    %203 = vector.extract_strided_slice %193 {offsets = [0, 64], sizes = [2, 64], strides = [1, 1]} : vector<2x192xf32> to vector<2x64xf32>
    %204 = arith.addf %202, %203 : vector<2x64xf32>
    %205 = arith.negf %204 : vector<2x64xf32>
    %206 = math.exp %205 : vector<2x64xf32>
    %cst_39 = arith.constant 1.000000e+00 : f32
    %207 = vector.broadcast %cst_39 : f32 to vector<2x64xf32>
    %208 = arith.addf %207, %206 : vector<2x64xf32>
    %209 = arith.divf %207, %208 : vector<2x64xf32>
    %210 = vector.extract_strided_slice %192 {offsets = [0, 128], sizes = [2, 64], strides = [1, 1]} : vector<2x192xf32> to vector<2x64xf32>
    %211 = vector.extract_strided_slice %193 {offsets = [0, 128], sizes = [2, 64], strides = [1, 1]} : vector<2x192xf32> to vector<2x64xf32>
    %212 = arith.addf %211, %10 : vector<2x64xf32>
    %213 = arith.mulf %201, %212 : vector<2x64xf32>
    %214 = arith.addf %210, %213 : vector<2x64xf32>
    %215 = math.tanh %214 : vector<2x64xf32>
    %cst_40 = arith.constant 1.000000e+00 : f32
    %216 = vector.broadcast %cst_40 : f32 to vector<2x64xf32>
    %217 = arith.subf %216, %209 : vector<2x64xf32>
    %218 = arith.mulf %217, %215 : vector<2x64xf32>
    %219 = arith.mulf %209, %190 : vector<2x64xf32>
    %220 = arith.addf %218, %219 : vector<2x64xf32>
    %221 = vector.extract_strided_slice %6 {offsets = [10, 0], sizes = [2, 64], strides = [1, 1]} : vector<16x64xf32> to vector<2x64xf32>
    %222 = arith.mulf %221, %220 : vector<2x64xf32>
    %cst_41 = arith.constant 1.000000e+00 : f32
    %223 = vector.broadcast %cst_41 : f32 to vector<2x64xf32>
    %224 = arith.subf %223, %221 : vector<2x64xf32>
    %225 = arith.mulf %224, %190 : vector<2x64xf32>
    %226 = arith.addf %222, %225 : vector<2x64xf32>
    %227 = arith.mulf %221, %226 : vector<2x64xf32>
    %228 = vector.extract_strided_slice %5 {offsets = [12, 0], sizes = [2, 192], strides = [1, 1]} : vector<16x192xf32> to vector<2x192xf32>
    %cst_42 = arith.constant dense<0.000000e+00> : vector<2x192xf32>
    %229 = tpu.matmul %226, %7, %cst_42 {dimension_numbers = #tpu.dot_dimension_numbers<[1], [0], [0], [1], [0, 0, 1, 1], [], []>} : vector<2x64xf32>, vector<64x192xf32>, vector<2x192xf32> -> vector<2x192xf32>
    %230 = vector.extract_strided_slice %228 {offsets = [0, 0], sizes = [2, 64], strides = [1, 1]} : vector<2x192xf32> to vector<2x64xf32>
    %231 = vector.extract_strided_slice %229 {offsets = [0, 0], sizes = [2, 64], strides = [1, 1]} : vector<2x192xf32> to vector<2x64xf32>
    %232 = arith.addf %230, %231 : vector<2x64xf32>
    %233 = arith.negf %232 : vector<2x64xf32>
    %234 = math.exp %233 : vector<2x64xf32>
    %cst_43 = arith.constant 1.000000e+00 : f32
    %235 = vector.broadcast %cst_43 : f32 to vector<2x64xf32>
    %236 = arith.addf %235, %234 : vector<2x64xf32>
    %237 = arith.divf %235, %236 : vector<2x64xf32>
    %238 = vector.extract_strided_slice %228 {offsets = [0, 64], sizes = [2, 64], strides = [1, 1]} : vector<2x192xf32> to vector<2x64xf32>
    %239 = vector.extract_strided_slice %229 {offsets = [0, 64], sizes = [2, 64], strides = [1, 1]} : vector<2x192xf32> to vector<2x64xf32>
    %240 = arith.addf %238, %239 : vector<2x64xf32>
    %241 = arith.negf %240 : vector<2x64xf32>
    %242 = math.exp %241 : vector<2x64xf32>
    %cst_44 = arith.constant 1.000000e+00 : f32
    %243 = vector.broadcast %cst_44 : f32 to vector<2x64xf32>
    %244 = arith.addf %243, %242 : vector<2x64xf32>
    %245 = arith.divf %243, %244 : vector<2x64xf32>
    %246 = vector.extract_strided_slice %228 {offsets = [0, 128], sizes = [2, 64], strides = [1, 1]} : vector<2x192xf32> to vector<2x64xf32>
    %247 = vector.extract_strided_slice %229 {offsets = [0, 128], sizes = [2, 64], strides = [1, 1]} : vector<2x192xf32> to vector<2x64xf32>
    %248 = arith.addf %247, %10 : vector<2x64xf32>
    %249 = arith.mulf %237, %248 : vector<2x64xf32>
    %250 = arith.addf %246, %249 : vector<2x64xf32>
    %251 = math.tanh %250 : vector<2x64xf32>
    %cst_45 = arith.constant 1.000000e+00 : f32
    %252 = vector.broadcast %cst_45 : f32 to vector<2x64xf32>
    %253 = arith.subf %252, %245 : vector<2x64xf32>
    %254 = arith.mulf %253, %251 : vector<2x64xf32>
    %255 = arith.mulf %245, %226 : vector<2x64xf32>
    %256 = arith.addf %254, %255 : vector<2x64xf32>
    %257 = vector.extract_strided_slice %6 {offsets = [12, 0], sizes = [2, 64], strides = [1, 1]} : vector<16x64xf32> to vector<2x64xf32>
    %258 = arith.mulf %257, %256 : vector<2x64xf32>
    %cst_46 = arith.constant 1.000000e+00 : f32
    %259 = vector.broadcast %cst_46 : f32 to vector<2x64xf32>
    %260 = arith.subf %259, %257 : vector<2x64xf32>
    %261 = arith.mulf %260, %226 : vector<2x64xf32>
    %262 = arith.addf %258, %261 : vector<2x64xf32>
    %263 = arith.mulf %257, %262 : vector<2x64xf32>
    %264 = vector.extract_strided_slice %5 {offsets = [14, 0], sizes = [2, 192], strides = [1, 1]} : vector<16x192xf32> to vector<2x192xf32>
    %cst_47 = arith.constant dense<0.000000e+00> : vector<2x192xf32>
    %265 = tpu.matmul %262, %7, %cst_47 {dimension_numbers = #tpu.dot_dimension_numbers<[1], [0], [0], [1], [0, 0, 1, 1], [], []>} : vector<2x64xf32>, vector<64x192xf32>, vector<2x192xf32> -> vector<2x192xf32>
    %266 = vector.extract_strided_slice %264 {offsets = [0, 0], sizes = [2, 64], strides = [1, 1]} : vector<2x192xf32> to vector<2x64xf32>
    %267 = vector.extract_strided_slice %265 {offsets = [0, 0], sizes = [2, 64], strides = [1, 1]} : vector<2x192xf32> to vector<2x64xf32>
    %268 = arith.addf %266, %267 : vector<2x64xf32>
    %269 = arith.negf %268 : vector<2x64xf32>
    %270 = math.exp %269 : vector<2x64xf32>
    %cst_48 = arith.constant 1.000000e+00 : f32
    %271 = vector.broadcast %cst_48 : f32 to vector<2x64xf32>
    %272 = arith.addf %271, %270 : vector<2x64xf32>
    %273 = arith.divf %271, %272 : vector<2x64xf32>
    %274 = vector.extract_strided_slice %264 {offsets = [0, 64], sizes = [2, 64], strides = [1, 1]} : vector<2x192xf32> to vector<2x64xf32>
    %275 = vector.extract_strided_slice %265 {offsets = [0, 64], sizes = [2, 64], strides = [1, 1]} : vector<2x192xf32> to vector<2x64xf32>
    %276 = arith.addf %274, %275 : vector<2x64xf32>
    %277 = arith.negf %276 : vector<2x64xf32>
    %278 = math.exp %277 : vector<2x64xf32>
    %cst_49 = arith.constant 1.000000e+00 : f32
    %279 = vector.broadcast %cst_49 : f32 to vector<2x64xf32>
    %280 = arith.addf %279, %278 : vector<2x64xf32>
    %281 = arith.divf %279, %280 : vector<2x64xf32>
    %282 = vector.extract_strided_slice %264 {offsets = [0, 128], sizes = [2, 64], strides = [1, 1]} : vector<2x192xf32> to vector<2x64xf32>
    %283 = vector.extract_strided_slice %265 {offsets = [0, 128], sizes = [2, 64], strides = [1, 1]} : vector<2x192xf32> to vector<2x64xf32>
    %284 = arith.addf %283, %10 : vector<2x64xf32>
    %285 = arith.mulf %273, %284 : vector<2x64xf32>
    %286 = arith.addf %282, %285 : vector<2x64xf32>
    %287 = math.tanh %286 : vector<2x64xf32>
    %cst_50 = arith.constant 1.000000e+00 : f32
    %288 = vector.broadcast %cst_50 : f32 to vector<2x64xf32>
    %289 = arith.subf %288, %281 : vector<2x64xf32>
    %290 = arith.mulf %289, %287 : vector<2x64xf32>
    %291 = arith.mulf %281, %262 : vector<2x64xf32>
    %292 = arith.addf %290, %291 : vector<2x64xf32>
    %293 = vector.extract_strided_slice %6 {offsets = [14, 0], sizes = [2, 64], strides = [1, 1]} : vector<16x64xf32> to vector<2x64xf32>
    %294 = arith.mulf %293, %292 : vector<2x64xf32>
    %cst_51 = arith.constant 1.000000e+00 : f32
    %295 = vector.broadcast %cst_51 : f32 to vector<2x64xf32>
    %296 = arith.subf %295, %293 : vector<2x64xf32>
    %297 = arith.mulf %296, %262 : vector<2x64xf32>
    %298 = arith.addf %294, %297 : vector<2x64xf32>
    %299 = arith.mulf %293, %298 : vector<2x64xf32>
    %300 = vector.extract_strided_slice %47 {offsets = [0, 0], sizes = [2, 32], strides = [1, 1]} : vector<2x64xf32> to vector<2x32xf32>
    %301 = vector.extract_strided_slice %299 {offsets = [0, 32], sizes = [2, 32], strides = [1, 1]} : vector<2x64xf32> to vector<2x32xf32>
    %302 = tpu.concatenate %300, %301 in 1 : vector<2x32xf32>, vector<2x32xf32> -> vector<2x64xf32>
    %303 = vector.extract_strided_slice %83 {offsets = [0, 0], sizes = [2, 32], strides = [1, 1]} : vector<2x64xf32> to vector<2x32xf32>
    %304 = vector.extract_strided_slice %263 {offsets = [0, 32], sizes = [2, 32], strides = [1, 1]} : vector<2x64xf32> to vector<2x32xf32>
    %305 = tpu.concatenate %303, %304 in 1 : vector<2x32xf32>, vector<2x32xf32> -> vector<2x64xf32>
    %306 = vector.extract_strided_slice %119 {offsets = [0, 0], sizes = [2, 32], strides = [1, 1]} : vector<2x64xf32> to vector<2x32xf32>
    %307 = vector.extract_strided_slice %227 {offsets = [0, 32], sizes = [2, 32], strides = [1, 1]} : vector<2x64xf32> to vector<2x32xf32>
    %308 = tpu.concatenate %306, %307 in 1 : vector<2x32xf32>, vector<2x32xf32> -> vector<2x64xf32>
    %309 = vector.extract_strided_slice %155 {offsets = [0, 0], sizes = [2, 32], strides = [1, 1]} : vector<2x64xf32> to vector<2x32xf32>
    %310 = vector.extract_strided_slice %191 {offsets = [0, 32], sizes = [2, 32], strides = [1, 1]} : vector<2x64xf32> to vector<2x32xf32>
    %311 = tpu.concatenate %309, %310 in 1 : vector<2x32xf32>, vector<2x32xf32> -> vector<2x64xf32>
    %312 = vector.extract_strided_slice %191 {offsets = [0, 0], sizes = [2, 32], strides = [1, 1]} : vector<2x64xf32> to vector<2x32xf32>
    %313 = vector.extract_strided_slice %155 {offsets = [0, 32], sizes = [2, 32], strides = [1, 1]} : vector<2x64xf32> to vector<2x32xf32>
    %314 = tpu.concatenate %312, %313 in 1 : vector<2x32xf32>, vector<2x32xf32> -> vector<2x64xf32>
    %315 = vector.extract_strided_slice %227 {offsets = [0, 0], sizes = [2, 32], strides = [1, 1]} : vector<2x64xf32> to vector<2x32xf32>
    %316 = vector.extract_strided_slice %119 {offsets = [0, 32], sizes = [2, 32], strides = [1, 1]} : vector<2x64xf32> to vector<2x32xf32>
    %317 = tpu.concatenate %315, %316 in 1 : vector<2x32xf32>, vector<2x32xf32> -> vector<2x64xf32>
    %318 = vector.extract_strided_slice %263 {offsets = [0, 0], sizes = [2, 32], strides = [1, 1]} : vector<2x64xf32> to vector<2x32xf32>
    %319 = vector.extract_strided_slice %83 {offsets = [0, 32], sizes = [2, 32], strides = [1, 1]} : vector<2x64xf32> to vector<2x32xf32>
    %320 = tpu.concatenate %318, %319 in 1 : vector<2x32xf32>, vector<2x32xf32> -> vector<2x64xf32>
    %321 = vector.extract_strided_slice %299 {offsets = [0, 0], sizes = [2, 32], strides = [1, 1]} : vector<2x64xf32> to vector<2x32xf32>
    %322 = vector.extract_strided_slice %47 {offsets = [0, 32], sizes = [2, 32], strides = [1, 1]} : vector<2x64xf32> to vector<2x32xf32>
    %323 = tpu.concatenate %321, %322 in 1 : vector<2x32xf32>, vector<2x32xf32> -> vector<2x64xf32>
    %324 = tpu.concatenate %302, %305, %308, %311, %314, %317, %320, %323 in 0 : vector<2x64xf32>, vector<2x64xf32>, vector<2x64xf32>, vector<2x64xf32>, vector<2x64xf32>, vector<2x64xf32>, vector<2x64xf32>, vector<2x64xf32> -> vector<16x64xf32>
    %c0_52 = arith.constant 0 : index
    %c0_53 = arith.constant 0 : index
    %325 = vector.load %arg6[%c0_52, %c0_53] : memref<64x8xf32, #tpu.memory_space<vmem>>, vector<64x8xf32>
    %cst_54 = arith.constant dense<0.000000e+00> : vector<16x8xf32>
    %326 = tpu.matmul %324, %325, %cst_54 {dimension_numbers = #tpu.dot_dimension_numbers<[1], [0], [0], [1], [0, 0, 1, 1], [], []>} : vector<16x64xf32>, vector<64x8xf32>, vector<16x8xf32> -> vector<16x8xf32>
    %c0_55 = arith.constant 0 : index
    %c0_56 = arith.constant 0 : index
    %327 = vector.load %arg7[%c0_55, %c0_56] : memref<1x8xf32, #tpu.memory_space<vmem>>, vector<1x8xf32>
    %328 = vector.broadcast %327 : vector<1x8xf32> to vector<16x8xf32>
    %329 = arith.addf %326, %328 : vector<16x8xf32>
    %cst_57 = arith.constant dense<0xFF800000> : vector<16xf32>
    %330 = vector.multi_reduction <maximumf>, %329, %cst_57 [1] : vector<16x8xf32> to vector<16xf32>
    %331 = vector.shape_cast %330 : vector<16xf32> to vector<16x1xf32>
    %332 = vector.broadcast %331 : vector<16x1xf32> to vector<16x8xf32>
    %333 = arith.subf %329, %332 : vector<16x8xf32>
    %334 = math.exp %333 : vector<16x8xf32>
    %cst_58 = arith.constant dense<0.000000e+00> : vector<16xf32>
    %335 = vector.multi_reduction <add>, %334, %cst_58 [1] : vector<16x8xf32> to vector<16xf32>
    %336 = vector.shape_cast %335 : vector<16xf32> to vector<16x1xf32>
    %337 = tpu.reciprocal %336 {approx = true} : vector<16x1xf32> -> vector<16x1xf32>
    %338 = vector.broadcast %337 : vector<16x1xf32> to vector<16x8xf32>
    %339 = arith.mulf %334, %338 : vector<16x8xf32>
    %c0_59 = arith.constant 0 : index
    %c0_60 = arith.constant 0 : index
    %340 = vector.load %arg8[%c0_59, %c0_60] : memref<16x8xf32, #tpu.memory_space<vmem>>, vector<16x8xf32>
    tpu.vector_store %arg8[%c0_59, %c0_60], %339 {strides = array<i32>} : memref<16x8xf32, #tpu.memory_space<vmem>>, vector<16x8xf32>,
    %341 = tpu.reduce_index %329 {axis = 1 : i32, kind = #tpu.reduction_kind<arg_max>} : vector<16x8xf32> -> vector<16xi32>
    %342 = vector.shape_cast %341 : vector<16xi32> to vector<16x1xi32>
    %c0_61 = arith.constant 0 : index
    %c0_62 = arith.constant 0 : index
    %343 = vector.load %arg9[%c0_61, %c0_62] : memref<16x1xi32, #tpu.memory_space<vmem>>, vector<16x1xi32>
    tpu.vector_store %arg9[%c0_61, %c0_62], %342 {strides = array<i32>} : memref<16x1xi32, #tpu.memory_space<vmem>>, vector<16x1xi32>,
    return
  }
}

</mosaic_0001>

<bundles_post_ra>
// kernel: charpos_forward.1
= control target key start
LH: loop header
LB: loop body
LE: loop exit
PB: predicated region body
PF: predicated region fallthrough
CT: control target
= control target key end

     0   :  { %v1510_v3 = vmov 0.0   ;;  %vm65_vm0 = vcmask 654336   ;;  %v55_v56 = vlaneseq  ;;  %vm174_vm1 = vcmask 523264   ;;  %s1973_s2 = inlined_call_operand.vmem [shape: f32[80,192], index: 2, kind: input, shape index: {}]   ;;  %s1974_s4 = inlined_call_operand.vmem [shape: f32[64,192], index: 4, kind: input, shape index: {}]   ;;  %s1975_s0 = inlined_call_operand.vmem [shape: f32[16,80], index: 0, kind: input, shape index: {}]   ;;  %s1976_s3 = inlined_call_operand.vmem [shape: f32[1,192], index: 3, kind: input, shape index: {}]   ;;  %s1977_s5 = inlined_call_operand.vmem [shape: f32[1,64], index: 5, kind: input, shape index: {}]   ;;  %s1978_s1 = inlined_call_operand.vmem [shape: f32[16,64], index: 1, kind: input, shape index: {}]   ;;  %s1979_s6 = inlined_call_operand.vmem [shape: f32[64,8], index: 6, kind: input, shape index: {}]   ;;  %s1980_s7 = inlined_call_operand.vmem [shape: f32[1,8], index: 7, kind: input, shape index: {}]   ;;  %s1981_s9 = inlined_call_operand.vmem [shape: s32[16,1], index: 9, kind: output, shape index: {1}]   ;;  %s1982_s8 = inlined_call_operand.vmem [shape: f32[16,8], index: 8, kind: output, shape index: {0}]  }
   0x1   :  { %v34_v0 = vld [vmem:[%s1973_s2 + $0x8] sm:$0xff]  ;;  %v36_v1 = vld [vmem:[%s1973_s2 + $0x18] sm:$0xff]  ;;  %v33_v2 = vld [vmem:[%s1973_s2] sm:$0xff]  ;;  %136 = vmatprep.mubr.f32.mxu0 %v1510_v3  ;;  %242 = vmatprep.mubr.f32.mxu1 %v1510_v3  ;;  %vm1063_vm2 = vcmask 261120   ;;  %vm1093_vm3 = vcmask 1041408   ;;  %vm1095_vm4 = vcmask 1043456  }
   0x2   :  { %v1288_v4 = vpack.c.bf16 %v36_v1, %v34_v0  ;;  %v35_v5 = vld [vmem:[%s1973_s2 + $0x10] sm:$0xff]  ;;  %v38_v6 = vld [vmem:[%s1973_s2 + $0x28] sm:$0xff]  ;;  %v40_v7 = vld [vmem:[%s1973_s2 + $0x38] sm:$0xff]  ;;  %v56_v57 = vshrl.u32 %v55_v56, 7  ;;  %vm1097_vm5 = vcmask 1045504   ;;  %vm1198_vm6 = vcmask 64512  }
   0x3   :  { %v1290_v8 = vpack.c.bf16 %v35_v5, %v33_v2  ;;  %v1292_v9 = vpack.c.bf16 %v40_v7, %v38_v6  ;;  %v37_v10 = vld [vmem:[%s1973_s2 + $0x20] sm:$0xff]  ;;  %v39_v11 = vld [vmem:[%s1973_s2 + $0x30] sm:$0xff]  ;;  %v152_v12 = vld [vmem:[%s1974_s4 + $0x8] sm:$0xff]  ;;  %vm1227_vm7 = vcmask 7168  }
   0x4   :  { %1289 = vmatprep.subr.bf16.mxu0 %v1288_v4  ;;  %v154_v13 = vld [vmem:[%s1974_s4 + $0x18] sm:$0xff]  ;;  %v151_v14 = vld [vmem:[%s1974_s4] sm:$0xff]  ;;  %v153_v15 = vld [vmem:[%s1974_s4 + $0x10] sm:$0xff]  ;;  %v1294_v16 = vpack.c.bf16 %v39_v11, %v37_v10  ;;  %v57_v58 = vsub.s32 0, %v56_v57  ;;  %v61_v7 = vsub.s32 1, %v56_v57 }
   0x5   :  { %1291 = vmatpush1.bf16.msra.mxu0 %v1290_v8  ;;  %v1600_v17 = vpack.c.bf16 %v154_v13, %v152_v12  ;;  %v1602_v18 = vpack.c.bf16 %v153_v15, %v151_v14  ;;  %v42_v19 = vld [vmem:[%s1973_s2 + $0x48] sm:$0xff]  ;;  %v44_v20 = vld [vmem:[%s1973_s2 + $0x58] sm:$0xff]  ;;  %v41_v21 = vld [vmem:[%s1973_s2 + $0x40] sm:$0xff] }
   0x6   :  { %1293 = vmatprep.subr.bf16.mxu0 %v1292_v9  ;;  %v1296_v22 = vpack.c.bf16 %v44_v20, %v42_v19  ;;  %v43_v23 = vld [vmem:[%s1973_s2 + $0x50] sm:$0xff]  ;;  %v156_v24 = vld [vmem:[%s1974_s4 + $0x28] sm:$0xff]  ;;  %v158_v25 = vld [vmem:[%s1974_s4 + $0x38] sm:$0xff] }
   0x7   :  { %1309 = vmatprep.subr.bf16.mxu1 %v1600_v17  ;;  %v1623_v26 = vpack.c.bf16 %v158_v25, %v156_v24  ;;  %v155_v27 = vld [vmem:[%s1974_s4 + $0x20] sm:$0xff]  ;;  %v157_v28 = vld [vmem:[%s1974_s4 + $0x30] sm:$0xff]  ;;  %v46_v29 = vld [vmem:[%s1973_s2 + $0x68] sm:$0xff]  ;;  %v1298_v32 = vpack.c.bf16 %v43_v23, %v41_v21 }
   0x8   :  { %1311 = vmatpush1.bf16.msra.mxu1 %v1602_v18  ;;  %v1635_v30 = vpack.c.bf16 %v157_v28, %v155_v27  ;;  %v48_v31 = vld [vmem:[%s1973_s2 + $0x78] sm:$0xff]  ;;  %v160_v33 = vld [vmem:[%s1974_s4 + $0x48] sm:$0xff]  ;;  %v159_v35 = vld [vmem:[%s1974_s4 + $0x40] sm:$0xff] }
   0x9   :  { %1295 = vmatpush1.bf16.msra.mxu0 %v1294_v16  ;;  %1313 = vmatprep.subr.bf16.mxu1 %v1623_v26  ;;  %v162_v34 = vld [vmem:[%s1974_s4 + $0x58] sm:$0xff]  ;;  %v1300_v36 = vpack.c.bf16 %v48_v31, %v46_v29  ;;  %v45_v37 = vld [vmem:[%s1973_s2 + $0x60] sm:$0xff]  ;;  %v47_v38 = vld [vmem:[%s1973_s2 + $0x70] sm:$0xff] }
   0xa   :  { %1297 = vmatprep.subr.bf16.mxu0 %v1296_v22  ;;  %v1656_v39 = vpack.c.bf16 %v162_v34, %v160_v33  ;;  %v161_v40 = vld [vmem:[%s1974_s4 + $0x50] sm:$0xff]  ;;  %v50_v41 = vld [vmem:[%s1973_s2 + $0x88] sm:$0xff]  ;;  %v52_v42 = vld [vmem:[%s1973_s2 + $0x98] sm:$0xff]  ;;  %v1302_v46 = vpack.c.bf16 %v47_v38, %v45_v37 }
   0xb   :  { %v164_v43 = vld [vmem:[%s1974_s4 + $0x68] sm:$0xff]  ;;  %v1671_v44 = vpack.c.bf16 %v161_v40, %v159_v35  ;;  %v166_v45 = vld [vmem:[%s1974_s4 + $0x78] sm:$0xff]  ;;  %v163_v48 = vld [vmem:[%s1974_s4 + $0x60] sm:$0xff]  ;;  %v1304_v50 = vpack.c.bf16 %v52_v42, %v50_v41 }
   0xc   :  { %1315 = vmatpush1.bf16.msra.mxu1 %v1635_v30  ;;  %v1677_v47 = vpack.c.bf16 %v166_v45, %v164_v43  ;;  %v165_v49 = vld [vmem:[%s1974_s4 + $0x70] sm:$0xff]  ;;  %v49_v51 = vld [vmem:[%s1973_s2 + $0x80] sm:$0xff] }
   0xd   :  { %1299 = vmatpush1.bf16.msra.mxu0 %v1298_v32  ;;  %1317 = vmatprep.subr.bf16.mxu1 %v1656_v39  ;;  %v51_v52 = vld [vmem:[%s1973_s2 + $0x90] sm:$0xff]  ;;  %v1692_v53 = vpack.c.bf16 %v165_v49, %v163_v48  ;;  %v31_v55 = vld [vmem:[%s1975_s0] sm:$0xff]  ;;  %v32_v48 = vld [vmem:[%s1975_s0 + $0x8] sm:$0xff] }
   0xe   :  { %1301 = vmatprep.subr.bf16.mxu0 %v1300_v36  ;;  %v1306_v54 = vpack.c.bf16 %v51_v52, %v49_v51  ;;  %v53_v59 = vld [vmem:[%s1976_s3] sm:$0x3]  ;;  %s1511_s3 = smov 64  }
   0xf   :  { %v1724_v60 = vrot.slane %v53_v59, %v57_v58  ;;  %v1733_v8 = vld [vmem:[%s1977_s5] ss:$0 sm:$0xff]  ;;  %v1735_v9 = vrot.slane %v53_v59, %v61_v7 }
  0x10   :  { %1319 = vmatpush1.bf16.msra.mxu1 %v1671_v44  ;;  %v1747_v23 = vld [vmem:[%s1978_s1] sm:$0xff] }
  0x11   :  { %1303 = vmatpush1.bf16.msra.mxu0 %v1302_v46  ;;  %1321 = vmatprep.subr.bf16.mxu1 %v1677_v47  ;;  %v1750_v24 = vsub.f32 1.0, %v1747_v23 }
  0x12   :  { %1305 = vmatprep.subr.bf16.mxu0 %v1304_v50 }
  0x13   :  { %v274_v25 = vmul.f32 0.0, %v1750_v24 }
  0x14   :  { %1323 = vmatpush1.bf16.msra.mxu1 %v1692_v53 }
  0x15   :  { %1307 = vmatpush1.bf16.msra.mxu0 %v1306_v54  ;;  %1325 = vmatprep.subr.bf16.mxu1 %v1600_v17 }
  0x16   :  { %1341 = vmatprep.subr.bf16.mxu0 %v1600_v17 }
  0x17   :  { %243 = vmatmul.mubr.f32.vlgmr.msra.gmra.mrb[0].mxu1 %v1510_v3 }
  0x18   :  { %1238 = vmatmul.mubr.msk.f32.vlgmr.msra.gmra.mrb[0].mxu0 %vm65_vm0, %v31_v55  ;;  %1327 = vmatpush1.bf16.msra.mxu1 %v1602_v18 }
  0x19   :  { %1329 = vmatprep.subr.bf16.mxu1 %v1623_v26  ;;  %344 = vmatprep.mubr.f32.mxu1 %v1510_v3 }
  0x1a   :  { %1343 = vmatpush1.bf16.msra.mxu0 %v1602_v18  ;;  %142 = vmatprep.mubr.f32.mxu0 %v1510_v3 }
  0x1b   :  { %1345 = vmatprep.subr.bf16.mxu0 %v1623_v26 }
  0x1c   :  { %1331 = vmatpush1.bf16.msra.mxu1 %v1635_v30  ;;  %1239 = vmatmul.mubr.msk.f32.gmra.mrb[2].mxu0 %vm65_vm0, %v32_v48 }
  0x1d   :  { %1333 = vmatprep.subr.bf16.mxu1 %v1656_v39  ;;  %457 = vmatprep.mubr.f32.mxu0 %v1510_v3 }
  0x1e   :  { %1347 = vmatpush1.bf16.msra.mxu0 %v1635_v30 }
  0x1f   :  { %1349 = vmatprep.subr.bf16.mxu0 %v1656_v39 }
  0x20   :  { %1335 = vmatpush1.bf16.msra.mxu1 %v1671_v44 }
  0x21   :  { %1337 = vmatprep.subr.bf16.mxu1 %v1677_v47 }
  0x22   :  { %1351 = vmatpush1.bf16.msra.mxu0 %v1671_v44 }
  0x23   :  { %1353 = vmatprep.subr.bf16.mxu0 %v1677_v47 }
  0x24   :  { %1339 = vmatpush1.bf16.msra.mxu1 %v1692_v53 }
  0x25   :  { %1357 = vmatprep.subr.bf16.mxu1 %v1600_v17 }
  0x26   :  { %1355 = vmatpush1.bf16.msra.mxu0 %v1692_v53 }
  0x27   :  { %1373 = vmatprep.subr.bf16.mxu0 %v1600_v17 }
  0xea   :  { %v244_v61 = vpop.f32.mrb[0].mxu1 }
  0xeb   :  { %v138_v62 = vpop.f32.mrb[0].mxu0  ;;  %v246_v63 = vpop.f32.mrb[1].mxu1 }
  0xec   :  { %v1727_v0 = vadd.f32 %v138_v62, %v1724_v60  ;;  %v140_v1 = vpop.f32.mrb[1].mxu0  ;;  %v256_v10 = vadd.f32 %v1733_v8, %v246_v63 }
  0xed   :  { %v1739_v12 = vadd.f32 %v140_v1, %v1735_v9 }
  0xee   :  { %v249_v2 = vadd.f32 %v244_v61, %v1727_v0 }
  0xef   :  { %v1796_v63 = vpop.f32.mrb[2].mxu0 }
  0xf0   :  { %v1241_v4 = vmul.f32 -1.442695, %v249_v2  ;;  %v1798_v1 = vpop.f32.mrb[3].mxu0 }
  0xf2   :  { %1454 = vpow2.f32 %v1241_v4 }
  0xfc   :  { %v1455_v5 = vpop.eup %1454 }
  0xfd   :  { %v253_v6 = vadd.f32 1.0, %v1455_v5 }
  0xff   :  { %1456 = vrcp.f32 %v253_v6 }
 0x109   :  { %v1457_v11 = vpop.eup %1456 }
 0x10a   :  { %v257_v13 = vmul.f32 %v1457_v11, %v256_v10  ;;  %v260_v16 = vsub.f32 1.0, %v1457_v11  ;;  %v266_v20 = vmul.f32 0.0, %v1457_v11 }
 0x10c   :  { %v258_v14 = vadd.f32 %v257_v13, %v1739_v12 }
 0x10e   :  { %1458 = vtanh.f32 %v258_v14 }
 0x118   :  { %v1459_v15 = vpop.eup %1458 }
 0x119   :  { %262 = vrot.lane.b32.xlu0 %v1459_v15, %s1511_s3 }
 0x18b   :  { %v263_v19 = vpop.permute.xlu0 %262 }
 0x18c   :  { %v265_v21 = vmul.f32 %v263_v19, %v260_v16 }
 0x18e   :  { %v267_v22 = vadd.f32 %v266_v20, %v265_v21 }
 0x190   :  { %269 = vrot.lane.b32.xlu0 %v267_v22, %s1511_s3 }
 0x202   :  { %v270_v27 = vpop.permute.xlu0 %269 }
 0x203   :  { %v272_v28 = vmul.f32 %v270_v27, %v1747_v23 }
 0x205   :  { %v1754_v29 = vadd.f32 %v274_v25, %v272_v28 }
 0x207   :  { %1242 = vmatmul.mubr.msk.f32.vlgmr.msra.gmra.mrb[2].mxu1 %vm174_vm1, %v1754_v29  ;;  %v374_v46 = vrot.slane %v1754_v29, 6 }
 0x208   :  { %1359 = vmatpush1.bf16.msra.mxu1 %v1602_v18  ;;  %570 = vmatprep.mubr.f32.mxu1 %v1510_v3 }
 0x209   :  { %1361 = vmatprep.subr.bf16.mxu1 %v1623_v26  ;;  %v386_v57 = vmul.f32 %v374_v46, %v1750_v24 }
 0x20c   :  { %1363 = vmatpush1.bf16.msra.mxu1 %v1635_v30 }
 0x20d   :  { %1365 = vmatprep.subr.bf16.mxu1 %v1656_v39 }
 0x210   :  { %1367 = vmatpush1.bf16.msra.mxu1 %v1671_v44 }
 0x211   :  { %1369 = vmatprep.subr.bf16.mxu1 %v1677_v47 }
 0x214   :  { %1371 = vmatpush1.bf16.msra.mxu1 %v1692_v53 }
 0x215   :  { %1389 = vmatprep.subr.bf16.mxu1 %v1600_v17 }
 0x2da   :  { %v346_v31 = vpop.f32.mrb[2].mxu1 }
 0x2db   :  { %v352_v32 = vrot.slane %v346_v31, 6  ;;  %v348_v33 = vpop.f32.mrb[3].mxu1 }
 0x2dc   :  { %v361_v38 = vadd.f32 %v1733_v8, %v348_v33 }
 0x2dd   :  { %v354_v34 = vadd.f32 %v352_v32, %v1727_v0 }
 0x2de   :  { %v363_v40 = vrot.slane %v361_v38, 6 }
 0x2df   :  { %v1243_v35 = vmul.f32 -1.442695, %v354_v34 }
 0x2e1   :  { %1460 = vpow2.f32 %v1243_v35 }
 0x2eb   :  { %v1461_v36 = vpop.eup %1460 }
 0x2ec   :  { %v358_v37 = vadd.f32 1.0, %v1461_v36 }
 0x2ee   :  { %1462 = vrcp.f32 %v358_v37 }
 0x2f8   :  { %v1463_v41 = vpop.eup %1462 }
 0x2f9   :  { %v365_v42 = vmul.f32 %v1463_v41, %v363_v40  ;;  %v368_v50 = vsub.f32 1.0, %v1463_v41 }
 0x2fb   :  { %v366_v43 = vadd.f32 %v365_v42, %v1739_v12 }
 0x2fd   :  { %1464 = vtanh.f32 %v366_v43 }
 0x307   :  { %v1465_v45 = vpop.eup %1464 }
 0x308   :  { %370 = vrot.lane.b32.xlu1 %v1465_v45, %s1511_s3 }
 0x30c   :  { %375 = vrot.lane.b32.xlu1 %v374_v46, %s1511_s3 }
 0x37a   :  { %v371_v49 = vpop.permute.xlu1 %370 }
 0x37b   :  { %v373_v52 = vmul.f32 %v371_v49, %v368_v50 }
 0x37e   :  { %v376_v51 = vpop.permute.xlu1 %375 }
 0x37f   :  { %v378_v54 = vmul.f32 %v1463_v41, %v376_v51 }
 0x381   :  { %v379_v55 = vadd.f32 %v378_v54, %v373_v52 }
 0x383   :  { %381 = vrot.lane.b32.xlu0 %v379_v55, %s1511_s3 }
 0x3f5   :  { %v382_v56 = vpop.permute.xlu0 %381 }
 0x3f6   :  { %v384_v58 = vmul.f32 %v382_v56, %v1747_v23 }
 0x3f8   :  { %v1781_v59 = vadd.f32 %v386_v57, %v384_v58 }
 0x3fa   :  { %v390_v61 = vrot.slane %v1781_v59, 2  ;;  %v487_v62 = vrot.slane %v1781_v59, 6 }
 0x3fc   :  { %488 = vrot.lane.b32.xlu0 %v487_v62, %s1511_s3  ;;  %1244 = vmatmul.mubr.msk.f32.vlgmr.msra.gmra.mrb[4].mxu0 %vm174_vm1, %v390_v61  ;;  %v499_v33 = vmul.f32 %v487_v62, %v1750_v24 }
 0x3fd   :  { %1375 = vmatpush1.bf16.msra.mxu0 %v1602_v18  ;;  %683 = vmatprep.mubr.f32.mxu0 %v1510_v3 }
 0x3fe   :  { %1377 = vmatprep.subr.bf16.mxu0 %v1623_v26 }
 0x401   :  { %1379 = vmatpush1.bf16.msra.mxu0 %v1635_v30 }
 0x402   :  { %1381 = vmatprep.subr.bf16.mxu0 %v1656_v39 }
 0x405   :  { %1383 = vmatpush1.bf16.msra.mxu0 %v1671_v44 }
 0x406   :  { %1385 = vmatprep.subr.bf16.mxu0 %v1677_v47 }
 0x409   :  { %1387 = vmatpush1.bf16.msra.mxu0 %v1692_v53 }
 0x40a   :  { %1405 = vmatprep.subr.bf16.mxu0 %v1600_v17 }
 0x46e   :  { %v489_v22 = vpop.permute.xlu0 %488 }
 0x4cf   :  { %v459_v2 = vpop.f32.mrb[4].mxu0 }
 0x4d0   :  { %v465_v4 = vrot.slane %v459_v2, 4  ;;  %v461_v5 = vpop.f32.mrb[5].mxu0 }
 0x4d1   :  { %v474_v13 = vadd.f32 %v1733_v8, %v461_v5 }
 0x4d2   :  { %v467_v6 = vadd.f32 %v465_v4, %v1727_v0 }
 0x4d3   :  { %v476_v14 = vrot.slane %v474_v13, 4 }
 0x4d4   :  { %v1245_v7 = vmul.f32 -1.442695, %v467_v6 }
 0x4d6   :  { %1466 = vpow2.f32 %v1245_v7 }
 0x4e0   :  { %v1467_v10 = vpop.eup %1466 }
 0x4e1   :  { %v471_v11 = vadd.f32 1.0, %v1467_v10 }
 0x4e3   :  { %1468 = vrcp.f32 %v471_v11 }
 0x4ed   :  { %v1469_v15 = vpop.eup %1468 }
 0x4ee   :  { %v478_v16 = vmul.f32 %v1469_v15, %v476_v14  ;;  %v481_v21 = vsub.f32 1.0, %v1469_v15  ;;  %v491_v27 = vmul.f32 %v1469_v15, %v489_v22 }
 0x4f0   :  { %v479_v19 = vadd.f32 %v478_v16, %v1739_v12  ;;  %v1847_v16 = vadd.f32 %v1798_v1, %v1735_v9  ;;  %v1855_v9 = vld [vmem:[%s1978_s1 + $0x8] sm:$0xff] }
 0x4f1   :  { %v1858_v1 = vsub.f32 1.0, %v1855_v9 }
 0x4f2   :  { %1470 = vtanh.f32 %v479_v19 }
 0x4fc   :  { %v1471_v20 = vpop.eup %1470 }
 0x4fd   :  { %483 = vrot.lane.b32.xlu1 %v1471_v20, %s1511_s3 }
 0x56f   :  { %v484_v25 = vpop.permute.xlu1 %483 }
 0x570   :  { %v486_v28 = vmul.f32 %v484_v25, %v481_v21 }
 0x572   :  { %v492_v31 = vadd.f32 %v491_v27, %v486_v28 }
 0x574   :  { %494 = vrot.lane.b32.xlu1 %v492_v31, %s1511_s3 }
 0x5e6   :  { %v495_v32 = vpop.permute.xlu1 %494 }
 0x5e7   :  { %v497_v34 = vmul.f32 %v495_v32, %v1747_v23 }
 0x5e9   :  { %v1807_v35 = vadd.f32 %v499_v33, %v497_v34 }
 0x5eb   :  { %v503_v36 = vrot.slane %v1807_v35, 4  ;;  %v600_v37 = vrot.slane %v1807_v35, 6 }
 0x5ed   :  { %601 = vrot.lane.b32.xlu1 %v600_v37, %s1511_s3  ;;  %1246 = vmatmul.mubr.msk.f32.vlgmr.msra.gmra.mrb[4].mxu1 %vm174_vm1, %v503_v36  ;;  %v612_v62 = vmul.f32 %v600_v37, %v1750_v24 }
 0x5ee   :  { %1391 = vmatpush1.bf16.msra.mxu1 %v1602_v18  ;;  %789 = vmatprep.mubr.f32.mxu1 %v1510_v3 }
 0x5ef   :  { %1393 = vmatprep.subr.bf16.mxu1 %v1623_v26 }
 0x5f2   :  { %1395 = vmatpush1.bf16.msra.mxu1 %v1635_v30 }
 0x5f3   :  { %1397 = vmatprep.subr.bf16.mxu1 %v1656_v39 }
 0x5f6   :  { %1399 = vmatpush1.bf16.msra.mxu1 %v1671_v44 }
 0x5f7   :  { %1401 = vmatprep.subr.bf16.mxu1 %v1677_v47 }
 0x5fa   :  { %1403 = vmatpush1.bf16.msra.mxu1 %v1692_v53 }
 0x5fb   :  { %1421 = vmatprep.subr.bf16.mxu1 %v1600_v17 }
 0x65f   :  { %v602_v55 = vpop.permute.xlu1 %601 }
 0x6c0   :  { %v572_v38 = vpop.f32.mrb[4].mxu1 }
 0x6c1   :  { %v578_v40 = vrot.slane %v572_v38, 2  ;;  %v574_v41 = vpop.f32.mrb[5].mxu1 }
 0x6c2   :  { %v587_v48 = vadd.f32 %v1733_v8, %v574_v41 }
 0x6c3   :  { %v580_v42 = vadd.f32 %v578_v40, %v1727_v0 }
 0x6c4   :  { %v589_v49 = vrot.slane %v587_v48, 2 }
 0x6c5   :  { %v1247_v43 = vmul.f32 -1.442695, %v580_v42 }
 0x6c7   :  { %1472 = vpow2.f32 %v1247_v43 }
 0x6d1   :  { %v1473_v45 = vpop.eup %1472 }
 0x6d2   :  { %v584_v46 = vadd.f32 1.0, %v1473_v45 }
 0x6d4   :  { %1474 = vrcp.f32 %v584_v46 }
 0x6de   :  { %v1475_v50 = vpop.eup %1474 }
 0x6df   :  { %v591_v51 = vmul.f32 %v1475_v50, %v589_v49  ;;  %v594_v17 = vsub.f32 1.0, %v1475_v50  ;;  %v604_v0 = vmul.f32 %v1475_v50, %v602_v55 }
 0x6e1   :  { %v592_v52 = vadd.f32 %v591_v51, %v1739_v12  ;;  %v1841_v12 = vadd.f32 %v1796_v63, %v1724_v60 }
 0x6e3   :  { %1476 = vtanh.f32 %v592_v52 }
 0x6ed   :  { %v1477_v54 = vpop.eup %1476 }
 0x6ee   :  { %596 = vrot.lane.b32.xlu0 %v1477_v54, %s1511_s3 }
 0x760   :  { %v597_v56 = vpop.permute.xlu0 %596 }
 0x761   :  { %v599_v57 = vmul.f32 %v597_v56, %v594_v17 }
 0x763   :  { %v605_v58 = vadd.f32 %v604_v0, %v599_v57  ;;  %v501_v0 = vmul.f32 %v1807_v35, %v1747_v23 }
 0x765   :  { %607 = vrot.lane.b32.xlu0 %v605_v58, %s1511_s3 }
 0x7d7   :  { %v608_v61 = vpop.permute.xlu0 %607 }
 0x7d8   :  { %v610_v2 = vmul.f32 %v608_v61, %v1747_v23 }
 0x7da   :  { %v613_v4 = vadd.f32 %v612_v62, %v610_v2  ;;  %v1082_v2 = vrot.slane %v501_v0, 2 }
 0x7dc   :  { %v616_v5 = vrot.slane %v613_v4, 6  ;;  %v614_v32 = vmul.f32 %v613_v4, %v1747_v23 }
 0x7de   :  { %707 = vrot.lane.b32.xlu0 %v616_v5, %s1511_s3  ;;  %1248 = vmatmul.mubr.msk.f32.vlgmr.msra.gmra.mrb[6].mxu0 %vm174_vm1, %v616_v5  ;;  %v719_v33 = vmul.f32 %v1858_v1, %v616_v5  ;;  %v1078_v37 = vrot.slane %v614_v32, 6 }
 0x7df   :  { %1407 = vmatpush1.bf16.msra.mxu0 %v1602_v18  ;;  %902 = vmatprep.mubr.f32.mxu0 %v1510_v3 }
 0x7e0   :  { %1409 = vmatprep.subr.bf16.mxu0 %v1623_v26 }
 0x7e3   :  { %1411 = vmatpush1.bf16.msra.mxu0 %v1635_v30 }
 0x7e4   :  { %1413 = vmatprep.subr.bf16.mxu0 %v1656_v39 }
 0x7e7   :  { %1415 = vmatpush1.bf16.msra.mxu0 %v1671_v44 }
 0x7e8   :  { %1417 = vmatprep.subr.bf16.mxu0 %v1677_v47 }
 0x7eb   :  { %1419 = vmatpush1.bf16.msra.mxu0 %v1692_v53 }
 0x850   :  { %v708_v21 = vpop.permute.xlu0 %707 }
 0x8b1   :  { %v685_v24 = vpop.f32.mrb[6].mxu0 }
 0x8b2   :  { %v690_v6 = vadd.f32 %v685_v24, %v1841_v12  ;;  %v687_v7 = vpop.f32.mrb[7].mxu0 }
 0x8b3   :  { %v697_v14 = vadd.f32 %v1733_v8, %v687_v7 }
 0x8b4   :  { %v1249_v10 = vmul.f32 -1.442695, %v690_v6 }
 0x8b6   :  { %1478 = vpow2.f32 %v1249_v10 }
 0x8c0   :  { %v1479_v11 = vpop.eup %1478 }
 0x8c1   :  { %v694_v13 = vadd.f32 1.0, %v1479_v11 }
 0x8c3   :  { %1480 = vrcp.f32 %v694_v13 }
 0x8cd   :  { %v1481_v15 = vpop.eup %1480 }
 0x8ce   :  { %v698_v19 = vmul.f32 %v1481_v15, %v697_v14  ;;  %v701_v20 = vsub.f32 1.0, %v1481_v15  ;;  %v710_v25 = vmul.f32 %v1481_v15, %v708_v21 }
 0x8d0   :  { %v699_v60 = vadd.f32 %v698_v19, %v1847_v16 }
 0x8d2   :  { %1482 = vtanh.f32 %v699_v60 }
 0x8dc   :  { %v1483_v63 = vpop.eup %1482 }
 0x8dd   :  { %703 = vrot.lane.b32.xlu1 %v1483_v63, %s1511_s3 }
 0x94f   :  { %v704_v22 = vpop.permute.xlu1 %703 }
 0x950   :  { %v706_v27 = vmul.f32 %v704_v22, %v701_v20 }
 0x952   :  { %v711_v28 = vadd.f32 %v710_v25, %v706_v27 }
 0x954   :  { %713 = vrot.lane.b32.xlu1 %v711_v28, %s1511_s3 }
 0x9c6   :  { %v714_v31 = vpop.permute.xlu1 %713 }
 0x9c7   :  { %v716_v34 = vmul.f32 %v714_v31, %v1855_v9 }
 0x9c9   :  { %v720_v36 = vadd.f32 %v719_v33, %v716_v34 }
 0x9cb   :  { %v721_v38 = vmul.f32 %v720_v36, %v1855_v9  ;;  %1250 = vmatmul.mubr.msk.f32.vlgmr.msra.gmra.mrb[6].mxu1 %vm174_vm1, %v720_v36  ;;  %v819_v40 = vrot.slane %v720_v36, 6 }
 0x9cc   :  { %1423 = vmatpush1.bf16.msra.mxu1 %v1602_v18  ;;  %1015 = vmatprep.mubr.f32.mxu1 %v1510_v3 }
 0x9cd   :  { %v1074_v41 = vrot.slane %v721_v38, 2  ;;  %v1080_v42 = vsel %vm1063_vm2, %v721_v38, %v1078_v37  ;;  %820 = vrot.lane.b32.xlu1 %v819_v40, %s1511_s3  ;;  %1425 = vmatprep.subr.bf16.mxu1 %v1623_v26  ;;  %v831_v58 = vmul.f32 %v819_v40, %v1858_v1  ;;  %v388_v38 = vmul.f32 %v1781_v59, %v1747_v23 }
 0x9cf   :  { %v1871_v43 = vsel %vm1063_vm2, %v614_v32, %v1074_v41 }
 0x9d0   :  { %1427 = vmatpush1.bf16.msra.mxu1 %v1635_v30 }
 0x9d1   :  { %1429 = vmatprep.subr.bf16.mxu1 %v1656_v39 }
 0x9d4   :  { %1431 = vmatpush1.bf16.msra.mxu1 %v1671_v44 }
 0x9d5   :  { %1433 = vmatprep.subr.bf16.mxu1 %v1677_v47 }
 0x9d8   :  { %1435 = vmatpush1.bf16.msra.mxu1 %v1692_v53 }
 0xa3f   :  { %v821_v52 = vpop.permute.xlu1 %820 }
 0xa9e   :  { %v791_v3 = vpop.f32.mrb[6].mxu1 }
 0xa9f   :  { %v797_v18 = vrot.slane %v791_v3, 6  ;;  %v793_v45 = vpop.f32.mrb[7].mxu1 }
 0xaa0   :  { %v806_v30 = vadd.f32 %v1733_v8, %v793_v45 }
 0xaa1   :  { %v799_v46 = vadd.f32 %v797_v18, %v1841_v12  ;;  %v1086_v18 = vrot.slane %v388_v38, 6 }
 0xaa2   :  { %v808_v50 = vrot.slane %v806_v30, 6 }
 0xaa3   :  { %v1251_v48 = vmul.f32 -1.442695, %v799_v46 }
 0xaa5   :  { %1484 = vpow2.f32 %v1251_v48 }
 0xaaf   :  { %v1485_v26 = vpop.eup %1484 }
 0xab0   :  { %v803_v49 = vadd.f32 1.0, %v1485_v26 }
 0xab2   :  { %1486 = vrcp.f32 %v803_v49 }
 0xabc   :  { %v1487_v39 = vpop.eup %1486 }
 0xabd   :  { %v810_v51 = vmul.f32 %v1487_v39, %v808_v50  ;;  %v813_v53 = vsub.f32 1.0, %v1487_v39  ;;  %v823_v17 = vmul.f32 %v1487_v39, %v821_v52 }
 0xabf   :  { %v811_v44 = vadd.f32 %v810_v51, %v1847_v16 }
 0xac1   :  { %1488 = vtanh.f32 %v811_v44 }
 0xacb   :  { %v1489_v47 = vpop.eup %1488 }
 0xacc   :  { %815 = vrot.lane.b32.xlu0 %v1489_v47, %s1511_s3 }
 0xb3e   :  { %v816_v54 = vpop.permute.xlu0 %815 }
 0xb3f   :  { %v818_v55 = vmul.f32 %v816_v54, %v813_v53 }
 0xb41   :  { %v824_v56 = vadd.f32 %v823_v17, %v818_v55 }
 0xb43   :  { %826 = vrot.lane.b32.xlu0 %v824_v56, %s1511_s3 }
 0xbb5   :  { %v827_v57 = vpop.permute.xlu0 %826 }
 0xbb6   :  { %v829_v61 = vmul.f32 %v827_v57, %v1855_v9  ;;  %v1102_v57 = vld [vmem:[%s1979_s6] sm:$0xff] }
 0xbb8   :  { %v832_v62 = vadd.f32 %v831_v58, %v829_v61 }
 0xbba   :  { %v833_v4 = vmul.f32 %v832_v62, %v1855_v9  ;;  %v835_v5 = vrot.slane %v832_v62, 2  ;;  %v932_v24 = vrot.slane %v832_v62, 6 }
 0xbbc   :  { %v1070_v6 = vrot.slane %v833_v4, 6  ;;  %v1084_v7 = vsel %vm1063_vm2, %v833_v4, %v1082_v2  ;;  %933 = vrot.lane.b32.xlu0 %v932_v24, %s1511_s3  ;;  %1252 = vmatmul.mubr.msk.f32.vlgmr.msra.gmra.mrb[8].mxu0 %vm174_vm1, %v835_v5  ;;  %v944_v41 = vmul.f32 %v932_v24, %v1858_v1  ;;  %v1106_v2 = vld [vmem:[%s1979_s6 + $0x20] sm:$0xff]  ;;  %v1107_v4 = vld [vmem:[%s1979_s6 + $0x28] sm:$0xff]  ;;  %v1108_v24 = vld [vmem:[%s1979_s6 + $0x30] sm:$0xff] }
 0xbbd   :  { %v1099_v35 = vsel %vm1093_vm3, %v1080_v42, %v1084_v7  ;;  %v1444_v5 = vpack.c.bf16 %v1107_v4, %v1106_v2 }
 0xbbe   :  { %v1893_v10 = vsel %vm1063_vm2, %v501_v0, %v1070_v6  ;;  %v1109_v6 = vld [vmem:[%s1979_s6 + $0x38] sm:$0xff] }
 0xc2e   :  { %v934_v32 = vpop.permute.xlu0 %933 }
 0xc8f   :  { %v904_v11 = vpop.f32.mrb[8].mxu0 }
 0xc90   :  { %v910_v13 = vrot.slane %v904_v11, 4  ;;  %v906_v14 = vpop.f32.mrb[9].mxu0 }
 0xc91   :  { %v919_v20 = vadd.f32 %v1733_v8, %v906_v14 }
 0xc92   :  { %v912_v15 = vadd.f32 %v910_v13, %v1841_v12 }
 0xc93   :  { %v921_v21 = vrot.slane %v919_v20, 4 }
 0xc94   :  { %v1253_v19 = vmul.f32 -1.442695, %v912_v15 }
 0xc96   :  { %1490 = vpow2.f32 %v1253_v19 }
 0xca0   :  { %v1491_v60 = vpop.eup %1490 }
 0xca1   :  { %v916_v63 = vadd.f32 1.0, %v1491_v60 }
 0xca3   :  { %1492 = vrcp.f32 %v916_v63  ;;  %v276_v63 = vmul.f32 %v1754_v29, %v1747_v23 }
 0xcad   :  { %v1493_v22 = vpop.eup %1492 }
 0xcae   :  { %v923_v25 = vmul.f32 %v1493_v22, %v921_v21  ;;  %v926_v31 = vsub.f32 1.0, %v1493_v22  ;;  %v936_v34 = vmul.f32 %v1493_v22, %v934_v32 }
 0xcb0   :  { %v924_v27 = vadd.f32 %v923_v25, %v1847_v16  ;;  %v1090_v25 = vrot.slane %v276_v63, 2 }
 0xcb2   :  { %1494 = vtanh.f32 %v924_v27 }
 0xcbc   :  { %v1495_v28 = vpop.eup %1494 }
 0xcbd   :  { %928 = vrot.lane.b32.xlu1 %v1495_v28, %s1511_s3 }
 0xd2f   :  { %v929_v33 = vpop.permute.xlu1 %928 }
 0xd30   :  { %v931_v36 = vmul.f32 %v929_v33, %v926_v31 }
 0xd32   :  { %v937_v37 = vadd.f32 %v936_v34, %v931_v36 }
 0xd34   :  { %939 = vrot.lane.b32.xlu1 %v937_v37, %s1511_s3 }
 0xda6   :  { %v940_v40 = vpop.permute.xlu1 %939 }
 0xda7   :  { %v942_v42 = vmul.f32 %v940_v40, %v1855_v9 }
 0xda9   :  { %v945_v3 = vadd.f32 %v944_v41, %v942_v42 }
 0xdab   :  { %v946_v45 = vmul.f32 %v945_v3, %v1855_v9  ;;  %v948_v46 = vrot.slane %v945_v3, 4  ;;  %v1045_v48 = vrot.slane %v945_v3, 6 }
 0xdad   :  { %v1066_v26 = vrot.slane %v946_v45, 2  ;;  %1046 = vrot.lane.b32.xlu1 %v1045_v48, %s1511_s3  ;;  %1254 = vmatmul.mubr.msk.f32.vlgmr.msra.gmra.mrb[8].mxu1 %vm174_vm1, %v948_v46  ;;  %v1088_v49 = vsel %vm1063_vm2, %v946_v45, %v1086_v18  ;;  %v1057_v20 = vmul.f32 %v1045_v48, %v1858_v1 }
 0xdae   :  { %v1100_v59 = vsel %vm1095_vm4, %v1099_v35, %v1088_v49  ;;  %v1448_v35 = vpack.c.bf16 %v1109_v6, %v1108_v24 }
 0xdaf   :  { %v1068_v30 = vsel %vm1063_vm2, %v388_v38, %v1066_v26 }
 0xe1f   :  { %v1047_v11 = vpop.permute.xlu1 %1046 }
 0xe80   :  { %v1017_v50 = vpop.f32.mrb[8].mxu1 }
 0xe81   :  { %v1023_v39 = vrot.slane %v1017_v50, 2  ;;  %v1019_v51 = vpop.f32.mrb[9].mxu1 }
 0xe82   :  { %v1032_v54 = vadd.f32 %v1733_v8, %v1019_v51  ;;  %v1104_v8 = vld [vmem:[%s1979_s6 + $0x10] sm:$0xff] }
 0xe83   :  { %v1025_v44 = vadd.f32 %v1023_v39, %v1841_v12  ;;  %v1103_v12 = vld [vmem:[%s1979_s6 + $0x8] sm:$0xff] }
 0xe84   :  { %v1034_v17 = vrot.slane %v1032_v54, 2  ;;  %v1436_v58 = vpack.c.bf16 %v1103_v12, %v1102_v57 }
 0xe85   :  { %v1255_v47 = vmul.f32 -1.442695, %v1025_v44 }
 0xe86   :  { %1437 = vmatprep.subr.bf16.mxu0 %v1436_v58 }
 0xe87   :  { %1496 = vpow2.f32 %v1255_v47  ;;  %1439 = vmatpush3.bf16.msra.mxu0 %v1436_v58 }
 0xe91   :  { %v1497_v53 = vpop.eup %1496 }
 0xe92   :  { %v1029_v52 = vadd.f32 1.0, %v1497_v53 }
 0xe94   :  { %1498 = vrcp.f32 %v1029_v52 }
 0xe9e   :  { %v1499_v55 = vpop.eup %1498 }
 0xe9f   :  { %v1036_v56 = vmul.f32 %v1499_v55, %v1034_v17  ;;  %v1039_v7 = vsub.f32 1.0, %v1499_v55  ;;  %v1049_v14 = vmul.f32 %v1499_v55, %v1047_v11 }
 0xea1   :  { %v1037_v0 = vadd.f32 %v1036_v56, %v1847_v16  ;;  %v1105_v16 = vld [vmem:[%s1979_s6 + $0x18] sm:$0xff] }
 0xea2   :  { %v1440_v62 = vpack.c.bf16 %v1105_v16, %v1104_v8 }
 0xea3   :  { %1500 = vtanh.f32 %v1037_v0 }
 0xea4   :  { %1441 = vmatprep.subr.bf16.mxu0 %v1440_v62 }
 0xea5   :  { %1443 = vmatpush3.bf16.msra.mxu0 %v1440_v62 }
 0xea6   :  { %1445 = vmatprep.subr.bf16.mxu0 %v1444_v5 }
 0xea9   :  { %1447 = vmatpush3.bf16.msra.mxu0 %v1444_v5 }
 0xeaa   :  { %1449 = vmatprep.subr.bf16.mxu0 %v1448_v35 }
 0xead   :  { %v1501_v61 = vpop.eup %1500  ;;  %1451 = vmatpush3.bf16.msra.mxu0 %v1448_v35 }
 0xeae   :  { %1041 = vrot.lane.b32.xlu0 %v1501_v61, %s1511_s3 }
 0xf20   :  { %v1042_v13 = vpop.permute.xlu0 %1041 }
 0xf21   :  { %v1044_v15 = vmul.f32 %v1042_v13, %v1039_v7 }
 0xf23   :  { %v1050_v19 = vadd.f32 %v1049_v14, %v1044_v15 }
 0xf25   :  { %1052 = vrot.lane.b32.xlu0 %v1050_v19, %s1511_s3 }
 0xf97   :  { %v1053_v60 = vpop.permute.xlu0 %1052 }
 0xf98   :  { %v1055_v21 = vmul.f32 %v1053_v60, %v1855_v9 }
 0xf9a   :  { %v1058_v22 = vadd.f32 %v1057_v20, %v1055_v21 }
 0xf9c   :  { %v1059_v27 = vmul.f32 %v1058_v22, %v1855_v9  ;;  %v1256_v9 = vld [vmem:[%s1980_s7] ss:$0 sm:$0xff] }
 0xf9e   :  { %v1061_v28 = vrot.slane %v1059_v27, 6  ;;  %v1092_v31 = vsel %vm1063_vm2, %v1059_v27, %v1090_v25 }
 0xf9f   :  { %v1101_v32 = vsel %vm1097_vm5, %v1100_v59, %v1092_v31 }
 0xfa0   :  { %v1064_v33 = vsel %vm1063_vm2, %v276_v63, %v1061_v28 }
 0xfa1   :  { %v1094_v34 = vsel %vm1093_vm3, %v1064_v33, %v1068_v30 }
 0xfa2   :  { %v1096_v23 = vsel %vm1095_vm4, %v1094_v34, %v1893_v10 }
 0xfa3   :  { %v1098_v29 = vsel %vm1097_vm5, %v1096_v23, %v1871_v43 }
 0xfa4   :  { %1285 = vmatprep.mubr.msk.f32.mxu0 %vm174_vm1, %v1098_v29 }
 0xfa5   :  { %1286 = vmatmul.mubr.msk.f32.vlgmr.msra.gmra.mrb[10].mxu0 %vm174_vm1, %v1101_v32 }
0x1078   :  { %v1287_v1 = vpop.f32.mrb[10].mxu0 }
0x1079   :  { %v1195_v36 = vadd.f32 %v1287_v1, %v1256_v9  ;;  %v1189_v37 = vpop.f32.mrb[11].mxu0 }
0x107a   :  { %v1190_v38 = vadd.f32 %v1256_v9, %v1189_v37 }
0x107b   :  { %v1202_v40 = vsel %vm1198_vm6, %v1195_v36, -inf }
0x107c   :  { %1203 = vmax.xlane.f32.xlu0 %v1202_v40  ;;  %v1199_v10 = vsel %vm1198_vm6, %v1190_v38, -inf }
0x107d   :  { %1200 = vmax.xlane.f32.xlu1 %v1199_v10 }
0x1109   :  { %v1204_v43 = vpop.xlane.xlu0 %1203 }
0x110a   :  { %v1206_v41 = vsub.f32 %v1195_v36, %v1204_v43  ;;  %v1201_v42 = vpop.xlane.xlu1 %1200 }
0x110b   :  { %v1205_v3 = vsub.f32 %v1190_v38, %v1201_v42 }
0x110c   :  { %v1209_v18 = vmul.f32 1.442695, %v1206_v41 }
0x110d   :  { %v1207_v45 = vmul.f32 1.442695, %v1205_v3 }
0x110e   :  { %1502 = vpow2.f32 %v1209_v18 }
0x110f   :  { %1504 = vpow2.f32 %v1207_v45 }
0x1118   :  { %v1503_v46 = vpop.eup %1502 }
0x1119   :  { %v1505_v48 = vpop.eup %1504  ;;  %v1214_v26 = vsel %vm1198_vm6, %v1503_v46, 0.0 }
0x111a   :  { %1215 = vadd.xlane.f32.xlu1 %v1214_v26  ;;  %v1211_v49 = vsel %vm1198_vm6, %v1505_v48, 0.0 }
0x111b   :  { %1212 = vadd.xlane.f32.xlu0 %v1211_v49 }
0x111e   :  { %1225 = vmax.index.xlane.f32.xlu1 %v1202_v40 }
0x111f   :  { %1223 = vmax.index.xlane.f32.xlu0 %v1199_v10 }
0x11a7   :  { %v1216_v59 = vpop.xlane.xlu1 %1215 }
0x11a8   :  { %1506 = vrcp.f32 %v1216_v59  ;;  %v1213_v30 = vpop.xlane.xlu0 %1212 }
0x11a9   :  { %1508 = vrcp.f32 %v1213_v30 }
0x11ab   :  { %v1226_v50 = vpop.xlane.xlu1 %1225 }
0x11ac   :  { %1229 = vst.msk [vmem:[%s1981_s9 + $0x8] sm:$0xff] %vm1227_vm7, %v1226_v50  ;;  %v1224_v39 = vpop.xlane.xlu0 %1223 }
0x11ad   :  { %1228 = vst.msk [vmem:[%s1981_s9] sm:$0xff] %vm1227_vm7, %v1224_v39 }
0x11b2   :  { %v1507_v51 = vpop.eup %1506 }
0x11b3   :  { %v1509_v44 = vpop.eup %1508  ;;  %v1220_v47 = vmul.f32 %v1507_v51, %v1503_v46 }
0x11b4   :  { %v1219_v53 = vmul.f32 %v1509_v44, %v1505_v48 }
0x11b5   :  { %1222 = vst.msk [vmem:[%s1982_s8 + $0x8] sm:$0xff] %vm1198_vm6, %v1220_v47 }
0x11b6   :  { %1221 = vst.msk [vmem:[%s1982_s8] sm:$0xff] %vm1198_vm6, %v1219_v53 }

</bundles_post_ra>
